<compile_context>
chip_gen: v5e
topology: v5e:2x2
jax: 0.10.0
libtpu: 0.0.40
codegen_flags: <defaults>
</compile_context>

<pallas_src>
import math

import jax
import jax.numpy as jnp
from jax import lax
from jax.experimental import pallas as pl
from jax.experimental.pallas import tpu as pltpu

NUM_HEADS = 4
LN_EPS = 1e-5
MASK_VALUE = -1000000.0


def _layernorm(x, gamma, beta):
    mean = jnp.mean(x, axis=-1, keepdims=True)
    var = jnp.mean((x - mean) ** 2, axis=-1, keepdims=True)
    return (x - mean) * lax.rsqrt(var + LN_EPS) * gamma + beta


def _softmax(s):
    m = jnp.max(s, axis=-1, keepdims=True)
    e = jnp.exp(s - m)
    # pl.reciprocal(approx=True) would move the divide to the EUP, but its
    # relative error breaks the 1e-4 reference check -> use exact reciprocal.
    return e * pl.reciprocal(jnp.sum(e, axis=-1, keepdims=True), approx=False)


def decoder_block_kernel(x_ref, enc_ref, evl_ref,
                         wqkv1_ref, wo1_ref,
                         wq2_ref, wkv2_ref, wo2_ref,
                         wf1_ref, wf2_ref,
                         ln_ref, bias_ref,
                         out_ref):
    B, S, H = x_ref.shape
    Se = enc_ref.shape[1]
    F = wf1_ref.shape[1]
    NH = NUM_HEADS
    dh = H // NH
    R = NH * S                       # packed (head, query) rows
    cdt = x_ref.dtype                # MXU input dtype (f32 here, bf16 in prod)
    f32 = jnp.float32

    # ---------------- hoisted masks (built exactly once) --------------------
    # head block mask: head_mask[(h, s), c] = 1.0 iff column c belongs to head h
    row_head = lax.broadcasted_iota(jnp.int32, (NH, S, H), 0).reshape(R, H)
    col_idx = lax.broadcasted_iota(jnp.int32, (R, H), 1)
    head_mask = ((col_idx >= row_head * dh) &
                 (col_idx < (row_head + 1) * dh)).astype(f32)          # (R, H)
    # causal mask over packed rows: key j visible iff j <= query index i
    q_idx = lax.broadcasted_iota(jnp.int32, (NH, S, S), 1).reshape(R, S)
    k_idx = lax.broadcasted_iota(jnp.int32, (NH, S, S), 2).reshape(R, S)
    causal_mask = (k_idx <= q_idx)[None]                               # (1, R, S)
    # cross-attention mask: key j visible iff j < enc_valid_lens[b]
    e_idx = lax.broadcasted_iota(jnp.int32, (B, R, Se), 2)
    enc_mask = e_idx < evl_ref[...].reshape(B, 1, 1)                   # (B, R, Se)

    ln_p = ln_ref[...].astype(f32)                                     # (6, H)
    g1, b1 = ln_p[0:1], ln_p[1:2]
    g2, b2 = ln_p[2:3], ln_p[3:4]
    g3, b3 = ln_p[4:5], ln_p[5:6]
    bf1 = bias_ref[0:1, :F].astype(f32)
    bf2 = bias_ref[1:2, :H].astype(f32)

    def tile_heads(t3):              # (B, S, H) -> (B, NH*S, H), rows = (head, step)
        return jnp.broadcast_to(t3[:, None], (B, NH, S, H)).reshape(B, R, H)

    def mha(q3, k3, v3, mask, wo):
        """q3:(B,S,H) (scale already folded into Wq), k3/v3:(B,Sk,H), f32."""
        qm = (tile_heads(q3) * head_mask[None]).astype(cdt)            # (B, R, H)
        s = jnp.einsum('brc,bkc->brk', qm, k3.astype(cdt),
                       preferred_element_type=f32)                     # (B, R, Sk)
        w = _softmax(jnp.where(mask, s, MASK_VALUE))
        o = jnp.einsum('brk,bkc->brc', w.astype(cdt), v3.astype(cdt),
                       preferred_element_type=f32)                     # (B, R, H)
        o4 = (o * head_mask[None]).reshape(B, NH, S, H)
        o3 = o4[:, 0]
        for h in range(1, NH):       # static 3-add head combine (pure VPU)
            o3 = o3 + o4[:, h]
        return jnp.dot(o3.reshape(B * S, H).astype(cdt), wo,
                       preferred_element_type=f32)                     # (B*S, H)

    x2d = x_ref[...].reshape(B * S, H)
    enc2d = enc_ref[...].reshape(B * Se, H)

    # ---- self-attention (key_values = X; causal dec_valid_lens mask) -------
    qkv = jnp.dot(x2d, wqkv1_ref[...], preferred_element_type=f32)     # (B*S, 3H)
    q1 = qkv[:, 0 * H:1 * H].reshape(B, S, H)
    k1 = qkv[:, 1 * H:2 * H].reshape(B, S, H)
    v1 = qkv[:, 2 * H:3 * H].reshape(B, S, H)
    x2 = mha(q1, k1, v1, causal_mask, wo1_ref[...])
    y = _layernorm(x2d.astype(f32) + x2, g1, b1)                       # (B*S, H)

    # ---- cross-attention over encoder outputs -------------------------------
    q2 = jnp.dot(y.astype(cdt), wq2_ref[...],
                 preferred_element_type=f32).reshape(B, S, H)
    kv2 = jnp.dot(enc2d, wkv2_ref[...], preferred_element_type=f32)    # (B*Se, 2H)
    k2 = kv2[:, 0 * H:1 * H].reshape(B, Se, H)
    v2 = kv2[:, 1 * H:2 * H].reshape(B, Se, H)
    y2 = mha(q2, k2, v2, enc_mask, wo2_ref[...])
    z = _layernorm(y + y2, g2, b2)

    # ---- position-wise FFN + AddNorm ----------------------------------------
    hdn = jnp.maximum(jnp.dot(z.astype(cdt), wf1_ref[...],
                              preferred_element_type=f32) + bf1, 0.0)
    z2 = jnp.dot(hdn.astype(cdt), wf2_ref[...],
                 preferred_element_type=f32) + bf2
    out = _layernorm(z + z2, g3, b3)
    out_ref[...] = out.reshape(B, S, H).astype(out_ref.dtype)


def decoder_block(x, enc_outputs, enc_valid_lens, params, *,
                  compute_dtype=jnp.float32):
    """Returns (output, new_key_values) mirroring (addnorm3(...), state[2][i]=X)."""
    (wq1, wk1, wv1, wo1, g1, b1,
     wq2, wk2, wv2, wo2, g2, b2,
     wf1, bf1, wf2, bf2, g3, b3) = params
    B, S, H = x.shape
    F = wf1.shape[1]
    assert H % NUM_HEADS == 0
    scale = 1.0 / math.sqrt(H // NUM_HEADS)
    cdt = compute_dtype

    # Fuse projections; fold the attention score scale into the Q weights.
    wqkv1 = jnp.concatenate([wq1 * scale, wk1, wv1], axis=1).astype(cdt)   # (H, 3H)
    wq2s = (wq2 * scale).astype(cdt)                                       # (H, H)
    wkv2 = jnp.concatenate([wk2, wv2], axis=1).astype(cdt)                 # (H, 2H)
    # Pack the small LayerNorm / FFN-bias params into two arrays (fewer DMAs).
    ln_pack = jnp.concatenate([g1, b1, g2, b2, g3, b3],
                              axis=0).astype(jnp.float32)                  # (6, H)
    W = max(F, H)
    bias_pack = jnp.stack(
        [jnp.pad(bf1[0], (0, W - F)), jnp.pad(bf2[0], (0, W - H))]
    ).astype(jnp.float32)                                                  # (2, W)
    evl = enc_valid_lens.astype(jnp.int32).reshape(B, 1)

    inputs = (x.astype(cdt), enc_outputs.astype(cdt), evl,
              wqkv1, wo1.astype(cdt), wq2s, wkv2, wo2.astype(cdt),
              wf1.astype(cdt), wf2.astype(cdt), ln_pack, bias_pack)

    def full_spec(a):
        nd = a.ndim
        return pl.BlockSpec(a.shape, lambda i, nd=nd: (0,) * nd)

    out = pl.pallas_call(
        decoder_block_kernel,
        out_shape=jax.ShapeDtypeStruct((B, S, H), x.dtype),
        grid=(1,),                      # whole batch in one step (tiny problem)
        in_specs=[full_spec(a) for a in inputs],
        out_specs=pl.BlockSpec((B, S, H), lambda i: (0, 0, 0)),
        compiler_params=pltpu.CompilerParams(
            dimension_semantics=("arbitrary",)),
    )(*inputs)

    # TODO(synk): inference path (state[2][i] is not None -> concat cached
    # key_values) and dropout noise are not represented in the kernel; the
    # training first-call semantics (key_values = X, dropout identity) are.
    key_values = x  # state[2][self.i] was None -> becomes X
    return out, key_values


# ---------------- pure-JAX reference (mirrors the PyTorch math) ----------------
def reference(x, enc, evl, params):
    (wq1, wk1, wv1, wo1, g1, b1,
     wq2, wk2, wv2, wo2, g2, b2,
     wf1, bf1, wf2, bf2, g3, b3) = params
    B, S, H = x.shape
    Se = enc.shape[1]
    dh = H // NUM_HEADS

    def mha(xq, xkv, wq, wk, wv, wo, mask):
        Sq, Sk = xq.shape[1], xkv.shape[1]
        q = (xq @ wq).reshape(B, Sq, NUM_HEADS, dh)
        k = (xkv @ wk).reshape(B, Sk, NUM_HEADS, dh)
        v = (xkv @ wv).reshape(B, Sk, NUM_HEADS, dh)
        s = jnp.einsum('bqhd,bkhd->bhqk', q, k) / math.sqrt(dh)
        s = jnp.where(mask, s, MASK_VALUE)
        w = jax.nn.softmax(s, axis=-1)
        o = jnp.einsum('bhqk,bkhd->bqhd', w, v).reshape(B, Sq, H)
        return o @ wo

    def ln(t, g, bta):
        m = t.mean(-1, keepdims=True)
        v = ((t - m) ** 2).mean(-1, keepdims=True)
        return (t - m) / jnp.sqrt(v + LN_EPS) * g + bta

    causal = (jnp.arange(S)[None, :] <= jnp.arange(S)[:, None])[None, None]
    x2 = mha(x, x, wq1, wk1, wv1, wo1,
             jnp.broadcast_to(causal, (B, NUM_HEADS, S, S)))
    y = ln(x + x2, g1, b1)
    em = (jnp.arange(Se)[None, :] < evl[:, None])[:, None, None, :]
    y2 = mha(y, enc, wq2, wk2, wv2, wo2,
             jnp.broadcast_to(em, (B, NUM_HEADS, S, Se)))
    z = ln(y + y2, g2, b2)
    h = jax.nn.relu(z @ wf1 + bf1)
    z2 = h @ wf2 + bf2
    return ln(z + z2, g3, b3)


if __name__ == "__main__":
    B, S, Se, H, F = 2, 8, 8, 32, 64   # batch, dec steps, enc steps, num_hiddens, ffn hidden

    key = jax.random.PRNGKey(0)
    ks = jax.random.split(key, 24)

    def w(k, shape, scale):
        return (scale * jax.random.normal(k, shape)).astype(jnp.float32)

    params = [
        w(ks[0], (H, H), 1.0 / math.sqrt(H)),   # wq1
        w(ks[1], (H, H), 1.0 / math.sqrt(H)),   # wk1
        w(ks[2], (H, H), 1.0 / math.sqrt(H)),   # wv1
        w(ks[3], (H, H), 1.0 / math.sqrt(H)),   # wo1
        (1.0 + 0.1 * jax.random.normal(ks[4], (1, H))).astype(jnp.float32),  # gamma1
        w(ks[5], (1, H), 0.1),                  # beta1
        w(ks[6], (H, H), 1.0 / math.sqrt(H)),   # wq2
        w(ks[7], (H, H), 1.0 / math.sqrt(H)),   # wk2
        w(ks[8], (H, H), 1.0 / math.sqrt(H)),   # wv2
        w(ks[9], (H, H), 1.0 / math.sqrt(H)),   # wo2
        (1.0 + 0.1 * jax.random.normal(ks[10], (1, H))).astype(jnp.float32),  # gamma2
        w(ks[11], (1, H), 0.1),                 # beta2
        w(ks[12], (H, F), 1.0 / math.sqrt(H)),  # ffn dense1 W
        w(ks[13], (1, F), 0.1),                 # ffn dense1 b
        w(ks[14], (F, H), 1.0 / math.sqrt(F)),  # ffn dense2 W
        w(ks[15], (1, H), 0.1),                 # ffn dense2 b
        (1.0 + 0.1 * jax.random.normal(ks[16], (1, H))).astype(jnp.float32),  # gamma3
        w(ks[17], (1, H), 0.1),                 # beta3
    ]

    x = jax.random.normal(ks[18], (B, S, H), dtype=jnp.float32)
    enc_outputs = jax.random.normal(ks[19], (B, Se, H), dtype=jnp.float32)
    enc_valid_lens = jnp.array([5, 8], dtype=jnp.int32)

    out, new_kv = decoder_block(x, enc_outputs, enc_valid_lens, params)
    out = jax.block_until_ready(out)

    ref = reference(x, enc_outputs, enc_valid_lens, params)
    assert out.shape == (B, S, H)
    assert jnp.allclose(out, ref, atol=1e-4, rtol=1e-4), "mismatch vs reference"
    assert jnp.array_equal(new_kv, x)
    print("KERNEL_OK")
</pallas_src>

<mosaic_0001>
module attributes {stable_mosaic.version = 11 : i64} {
  func.func @decoder_block_kernel(%arg0: i32, %arg1: memref<2x8x32xf32, #tpu.memory_space<vmem>>, %arg2: memref<2x8x32xf32, #tpu.memory_space<vmem>>, %arg3: memref<2x1xi32, #tpu.memory_space<vmem>>, %arg4: memref<32x96xf32, #tpu.memory_space<vmem>>, %arg5: memref<32x32xf32, #tpu.memory_space<vmem>>, %arg6: memref<32x32xf32, #tpu.memory_space<vmem>>, %arg7: memref<32x64xf32, #tpu.memory_space<vmem>>, %arg8: memref<32x32xf32, #tpu.memory_space<vmem>>, %arg9: memref<32x64xf32, #tpu.memory_space<vmem>>, %arg10: memref<64x32xf32, #tpu.memory_space<vmem>>, %arg11: memref<6x32xf32, #tpu.memory_space<vmem>>, %arg12: memref<2x64xf32, #tpu.memory_space<vmem>>, %arg13: memref<2x8x32xf32, #tpu.memory_space<vmem>>) attributes {dimension_semantics = [#tpu.dimension_semantics<arbitrary>], iteration_bounds = array<i64: 1>, scalar_prefetch = 0 : i64, scratch_operands = 0 : i64, tpu.core_type = #tpu.core_type<tc>, window_params = [{pipeline_mode = #tpu.pipeline_mode<synchronous>, transform_indices = @transform_0, window_bounds = array<i64: 2, 8, 32>}, {pipeline_mode = #tpu.pipeline_mode<synchronous>, transform_indices = @transform_1, window_bounds = array<i64: 2, 8, 32>}, {pipeline_mode = #tpu.pipeline_mode<synchronous>, transform_indices = @transform_2, window_bounds = array<i64: 2, 1>}, {pipeline_mode = #tpu.pipeline_mode<synchronous>, transform_indices = @transform_3, window_bounds = array<i64: 32, 96>}, {pipeline_mode = #tpu.pipeline_mode<synchronous>, transform_indices = @transform_4, window_bounds = array<i64: 32, 32>}, {pipeline_mode = #tpu.pipeline_mode<synchronous>, transform_indices = @transform_5, window_bounds = array<i64: 32, 32>}, {pipeline_mode = #tpu.pipeline_mode<synchronous>, transform_indices = @transform_6, window_bounds = array<i64: 32, 64>}, {pipeline_mode = #tpu.pipeline_mode<synchronous>, transform_indices = @transform_7, window_bounds = array<i64: 32, 32>}, {pipeline_mode = #tpu.pipeline_mode<synchronous>, transform_indices = @transform_8, window_bounds = array<i64: 32, 64>}, {pipeline_mode = #tpu.pipeline_mode<synchronous>, transform_indices = @transform_9, window_bounds = array<i64: 64, 32>}, {pipeline_mode = #tpu.pipeline_mode<synchronous>, transform_indices = @transform_10, window_bounds = array<i64: 6, 32>}, {pipeline_mode = #tpu.pipeline_mode<synchronous>, transform_indices = @transform_11, window_bounds = array<i64: 2, 64>}, {pipeline_mode = #tpu.pipeline_mode<synchronous>, transform_indices = @transform_12, window_bounds = array<i64: 2, 8, 32>}]} {
    %0 = tpu.iota {dimensions = array<i32: 0>} : vector<4x8x32xi32>
    %1 = vector.shape_cast %0 : vector<4x8x32xi32> to vector<32x32xi32>
    %2 = tpu.iota {dimensions = array<i32: 1>} : vector<32x32xi32>
    %c8_i32 = arith.constant 8 : i32
    %3 = vector.broadcast %c8_i32 : i32 to vector<32x32xi32>
    %4 = arith.muli %1, %3 : vector<32x32xi32>
    %5 = arith.cmpi sge, %2, %4 : vector<32x32xi32>
    %c1_i32 = arith.constant 1 : i32
    %6 = vector.broadcast %c1_i32 : i32 to vector<32x32xi32>
    %7 = arith.addi %1, %6 : vector<32x32xi32>
    %c8_i32_0 = arith.constant 8 : i32
    %8 = vector.broadcast %c8_i32_0 : i32 to vector<32x32xi32>
    %9 = arith.muli %7, %8 : vector<32x32xi32>
    %10 = arith.cmpi slt, %2, %9 : vector<32x32xi32>
    %11 = arith.andi %5, %10 : vector<32x32xi1>
    %12 = arith.extui %11 : vector<32x32xi1> to vector<32x32xi32>
    %13 = arith.sitofp %12 : vector<32x32xi32> to vector<32x32xf32>
    %14 = tpu.iota {dimensions = array<i32: 1>} : vector<4x8x8xi32>
    %15 = vector.shape_cast %14 : vector<4x8x8xi32> to vector<32x8xi32>
    %16 = tpu.iota {dimensions = array<i32: 2>} : vector<4x8x8xi32>
    %17 = vector.shape_cast %16 : vector<4x8x8xi32> to vector<32x8xi32>
    %18 = arith.cmpi sle, %17, %15 : vector<32x8xi32>
    %19 = vector.shape_cast %18 : vector<32x8xi1> to vector<1x32x8xi1>
    %20 = tpu.iota {dimensions = array<i32: 2>} : vector<2x32x8xi32>
    %c0 = arith.constant 0 : index
    %c0_1 = arith.constant 0 : index
    %21 = vector.load %arg3[%c0, %c0_1] : memref<2x1xi32, #tpu.memory_space<vmem>>, vector<2x1xi32>
    %22 = vector.shape_cast %21 : vector<2x1xi32> to vector<2x1x1xi32>
    %23 = vector.broadcast %22 : vector<2x1x1xi32> to vector<2x32x8xi32>
    %24 = arith.cmpi slt, %20, %23 : vector<2x32x8xi32>
    %c0_2 = arith.constant 0 : index
    %c0_3 = arith.constant 0 : index
    %25 = vector.load %arg11[%c0_2, %c0_3] : memref<6x32xf32, #tpu.memory_space<vmem>>, vector<6x32xf32>
    %26 = vector.extract_strided_slice %25 {offsets = [0, 0], sizes = [1, 32], strides = [1, 1]} : vector<6x32xf32> to vector<1x32xf32>
    %27 = vector.extract_strided_slice %25 {offsets = [1, 0], sizes = [1, 32], strides = [1, 1]} : vector<6x32xf32> to vector<1x32xf32>
    %28 = vector.extract_strided_slice %25 {offsets = [2, 0], sizes = [1, 32], strides = [1, 1]} : vector<6x32xf32> to vector<1x32xf32>
    %29 = vector.extract_strided_slice %25 {offsets = [3, 0], sizes = [1, 32], strides = [1, 1]} : vector<6x32xf32> to vector<1x32xf32>
    %30 = vector.extract_strided_slice %25 {offsets = [4, 0], sizes = [1, 32], strides = [1, 1]} : vector<6x32xf32> to vector<1x32xf32>
    %31 = vector.extract_strided_slice %25 {offsets = [5, 0], sizes = [1, 32], strides = [1, 1]} : vector<6x32xf32> to vector<1x32xf32>
    %c0_4 = arith.constant 0 : index
    %c0_5 = arith.constant 0 : index
    %32 = vector.load %arg12[%c0_4, %c0_5] : memref<2x64xf32, #tpu.memory_space<vmem>>, vector<1x64xf32>
    %c1 = arith.constant 1 : index
    %c0_6 = arith.constant 0 : index
    %33 = vector.load %arg12[%c1, %c0_6] : memref<2x64xf32, #tpu.memory_space<vmem>>, vector<1x32xf32>
    %c0_7 = arith.constant 0 : index
    %c0_8 = arith.constant 0 : index
    %c0_9 = arith.constant 0 : index
    %34 = vector.load %arg1[%c0_7, %c0_8, %c0_9] : memref<2x8x32xf32, #tpu.memory_space<vmem>>, vector<2x8x32xf32>
    %35 = vector.shape_cast %34 : vector<2x8x32xf32> to vector<16x32xf32>
    %c0_10 = arith.constant 0 : index
    %c0_11 = arith.constant 0 : index
    %c0_12 = arith.constant 0 : index
    %36 = vector.load %arg2[%c0_10, %c0_11, %c0_12] : memref<2x8x32xf32, #tpu.memory_space<vmem>>, vector<2x8x32xf32>
    %37 = vector.shape_cast %36 : vector<2x8x32xf32> to vector<16x32xf32>
    %c0_13 = arith.constant 0 : index
    %c0_14 = arith.constant 0 : index
    %38 = vector.load %arg4[%c0_13, %c0_14] : memref<32x96xf32, #tpu.memory_space<vmem>>, vector<32x96xf32>
    %cst = arith.constant dense<0.000000e+00> : vector<16x96xf32>
    %39 = tpu.matmul %35, %38, %cst {dimension_numbers = #tpu.dot_dimension_numbers<[1], [0], [0], [1], [0, 0, 1, 1], [], []>} : vector<16x32xf32>, vector<32x96xf32>, vector<16x96xf32> -> vector<16x96xf32>
    %40 = vector.extract_strided_slice %39 {offsets = [0, 0], sizes = [16, 32], strides = [1, 1]} : vector<16x96xf32> to vector<16x32xf32>
    %41 = vector.shape_cast %40 : vector<16x32xf32> to vector<2x8x32xf32>
    %42 = vector.extract_strided_slice %39 {offsets = [0, 32], sizes = [16, 32], strides = [1, 1]} : vector<16x96xf32> to vector<16x32xf32>
    %43 = vector.shape_cast %42 : vector<16x32xf32> to vector<2x8x32xf32>
    %44 = vector.extract_strided_slice %39 {offsets = [0, 64], sizes = [16, 32], strides = [1, 1]} : vector<16x96xf32> to vector<16x32xf32>
    %45 = vector.shape_cast %44 : vector<16x32xf32> to vector<2x8x32xf32>
    %c0_15 = arith.constant 0 : index
    %c0_16 = arith.constant 0 : index
    %46 = vector.load %arg5[%c0_15, %c0_16] : memref<32x32xf32, #tpu.memory_space<vmem>>, vector<32x32xf32>
    %47 = vector.shape_cast %41 : vector<2x8x32xf32> to vector<2x1x8x32xf32>
    %48 = vector.shape_cast %47 : vector<2x1x8x32xf32> to vector<2x1x8x32xf32>
    %49 = vector.broadcast %48 : vector<2x1x8x32xf32> to vector<2x4x8x32xf32>
    %50 = vector.shape_cast %49 : vector<2x4x8x32xf32> to vector<2x32x32xf32>
    %51 = vector.shape_cast %13 : vector<32x32xf32> to vector<1x32x32xf32>
    %52 = vector.broadcast %51 : vector<1x32x32xf32> to vector<2x32x32xf32>
    %53 = arith.mulf %50, %52 : vector<2x32x32xf32>
    "tpu.trace_start"() <{level = 10 : i32, message = "brc,bkc->brk"}> : () -> ()
    %cst_17 = arith.constant dense<0.000000e+00> : vector<2x32x8xf32>
    %54 = tpu.matmul %53, %43, %cst_17 {dimension_numbers = #tpu.dot_dimension_numbers<[2], [2], [1], [1], [0, 0, 0, 1, 1, 1], [0], [0]>} : vector<2x32x32xf32>, vector<2x8x32xf32>, vector<2x32x8xf32> -> vector<2x32x8xf32>
    %cst_18 = arith.constant -1.000000e+06 : f32
    "tpu.trace_stop"() : () -> ()
    %55 = vector.shape_cast %19 : vector<1x32x8xi1> to vector<1x32x8xi1>
    %56 = vector.broadcast %55 : vector<1x32x8xi1> to vector<2x32x8xi1>
    %57 = vector.broadcast %cst_18 : f32 to vector<2x32x8xf32>
    %58 = arith.select %56, %54, %57 : vector<2x32x8xi1>, vector<2x32x8xf32>
    %cst_19 = arith.constant dense<0xFF800000> : vector<2x32xf32>
    %59 = vector.multi_reduction <maximumf>, %58, %cst_19 [2] : vector<2x32x8xf32> to vector<2x32xf32>
    %60 = vector.shape_cast %59 : vector<2x32xf32> to vector<2x32x1xf32>
    %61 = vector.broadcast %60 : vector<2x32x1xf32> to vector<2x32x8xf32>
    %62 = arith.subf %58, %61 : vector<2x32x8xf32>
    %63 = math.exp %62 : vector<2x32x8xf32>
    %cst_20 = arith.constant dense<0.000000e+00> : vector<2x32xf32>
    %64 = vector.multi_reduction <add>, %63, %cst_20 [2] : vector<2x32x8xf32> to vector<2x32xf32>
    %65 = vector.shape_cast %64 : vector<2x32xf32> to vector<2x32x1xf32>
    %66 = tpu.reciprocal %65 : vector<2x32x1xf32> -> vector<2x32x1xf32>
    %67 = vector.broadcast %66 : vector<2x32x1xf32> to vector<2x32x8xf32>
    %68 = arith.mulf %63, %67 : vector<2x32x8xf32>
    "tpu.trace_start"() <{level = 10 : i32, message = "brk,bkc->brc"}> : () -> ()
    %cst_21 = arith.constant dense<0.000000e+00> : vector<2x32x32xf32>
    %69 = tpu.matmul %68, %45, %cst_21 {dimension_numbers = #tpu.dot_dimension_numbers<[2], [1], [1], [2], [0, 0, 0, 1, 1, 2], [0], [0]>} : vector<2x32x8xf32>, vector<2x8x32xf32>, vector<2x32x32xf32> -> vector<2x32x32xf32>
    "tpu.trace_stop"() : () -> ()
    %70 = vector.shape_cast %13 : vector<32x32xf32> to vector<1x32x32xf32>
    %71 = vector.broadcast %70 : vector<1x32x32xf32> to vector<2x32x32xf32>
    %72 = arith.mulf %69, %71 : vector<2x32x32xf32>
    %73 = vector.shape_cast %72 : vector<2x32x32xf32> to vector<2x4x8x32xf32>
    %74 = vector.extract_strided_slice %73 {offsets = [0, 0, 0, 0], sizes = [2, 1, 8, 32], strides = [1, 1, 1, 1]} : vector<2x4x8x32xf32> to vector<2x1x8x32xf32>
    %75 = vector.shape_cast %74 : vector<2x1x8x32xf32> to vector<2x8x32xf32>
    %76 = vector.extract_strided_slice %73 {offsets = [0, 1, 0, 0], sizes = [2, 1, 8, 32], strides = [1, 1, 1, 1]} : vector<2x4x8x32xf32> to vector<2x1x8x32xf32>
    %77 = vector.shape_cast %76 : vector<2x1x8x32xf32> to vector<2x8x32xf32>
    %78 = arith.addf %75, %77 : vector<2x8x32xf32>
    %79 = vector.extract_strided_slice %73 {offsets = [0, 2, 0, 0], sizes = [2, 1, 8, 32], strides = [1, 1, 1, 1]} : vector<2x4x8x32xf32> to vector<2x1x8x32xf32>
    %80 = vector.shape_cast %79 : vector<2x1x8x32xf32> to vector<2x8x32xf32>
    %81 = arith.addf %78, %80 : vector<2x8x32xf32>
    %82 = vector.extract_strided_slice %73 {offsets = [0, 3, 0, 0], sizes = [2, 1, 8, 32], strides = [1, 1, 1, 1]} : vector<2x4x8x32xf32> to vector<2x1x8x32xf32>
    %83 = vector.shape_cast %82 : vector<2x1x8x32xf32> to vector<2x8x32xf32>
    %84 = arith.addf %81, %83 : vector<2x8x32xf32>
    %85 = vector.shape_cast %84 : vector<2x8x32xf32> to vector<16x32xf32>
    %cst_22 = arith.constant dense<0.000000e+00> : vector<16x32xf32>
    %86 = tpu.matmul %85, %46, %cst_22 {dimension_numbers = #tpu.dot_dimension_numbers<[1], [0], [0], [1], [0, 0, 1, 1], [], []>} : vector<16x32xf32>, vector<32x32xf32>, vector<16x32xf32> -> vector<16x32xf32>
    %87 = arith.addf %35, %86 : vector<16x32xf32>
    %cst_23 = arith.constant dense<0.000000e+00> : vector<16xf32>
    %88 = vector.multi_reduction <add>, %87, %cst_23 [1] : vector<16x32xf32> to vector<16xf32>
    %89 = vector.shape_cast %88 : vector<16xf32> to vector<16x1xf32>
    %cst_24 = arith.constant 3.200000e+01 : f32
    %90 = vector.broadcast %cst_24 : f32 to vector<16x1xf32>
    %91 = arith.divf %89, %90 : vector<16x1xf32>
    %92 = vector.broadcast %91 : vector<16x1xf32> to vector<16x32xf32>
    %93 = arith.subf %87, %92 : vector<16x32xf32>
    %94 = arith.mulf %93, %93 : vector<16x32xf32>
    %cst_25 = arith.constant dense<0.000000e+00> : vector<16xf32>
    %95 = vector.multi_reduction <add>, %94, %cst_25 [1] : vector<16x32xf32> to vector<16xf32>
    %96 = vector.shape_cast %95 : vector<16xf32> to vector<16x1xf32>
    %cst_26 = arith.constant 3.200000e+01 : f32
    %97 = vector.broadcast %cst_26 : f32 to vector<16x1xf32>
    %98 = arith.divf %96, %97 : vector<16x1xf32>
    %99 = vector.broadcast %91 : vector<16x1xf32> to vector<16x32xf32>
    %100 = arith.subf %87, %99 : vector<16x32xf32>
    %cst_27 = arith.constant 9.99999974E-6 : f32
    %101 = vector.broadcast %cst_27 : f32 to vector<16x1xf32>
    %102 = arith.addf %98, %101 : vector<16x1xf32>
    %103 = math.rsqrt %102 : vector<16x1xf32>
    %104 = vector.broadcast %103 : vector<16x1xf32> to vector<16x32xf32>
    %105 = arith.mulf %100, %104 : vector<16x32xf32>
    %106 = vector.broadcast %26 : vector<1x32xf32> to vector<16x32xf32>
    %107 = arith.mulf %105, %106 : vector<16x32xf32>
    %108 = vector.broadcast %27 : vector<1x32xf32> to vector<16x32xf32>
    %109 = arith.addf %107, %108 : vector<16x32xf32>
    %c0_28 = arith.constant 0 : index
    %c0_29 = arith.constant 0 : index
    %110 = vector.load %arg6[%c0_28, %c0_29] : memref<32x32xf32, #tpu.memory_space<vmem>>, vector<32x32xf32>
    %cst_30 = arith.constant dense<0.000000e+00> : vector<16x32xf32>
    %111 = tpu.matmul %109, %110, %cst_30 {dimension_numbers = #tpu.dot_dimension_numbers<[1], [0], [0], [1], [0, 0, 1, 1], [], []>} : vector<16x32xf32>, vector<32x32xf32>, vector<16x32xf32> -> vector<16x32xf32>
    %112 = vector.shape_cast %111 : vector<16x32xf32> to vector<2x8x32xf32>
    %c0_31 = arith.constant 0 : index
    %c0_32 = arith.constant 0 : index
    %113 = vector.load %arg7[%c0_31, %c0_32] : memref<32x64xf32, #tpu.memory_space<vmem>>, vector<32x64xf32>
    %cst_33 = arith.constant dense<0.000000e+00> : vector<16x64xf32>
    %114 = tpu.matmul %37, %113, %cst_33 {dimension_numbers = #tpu.dot_dimension_numbers<[1], [0], [0], [1], [0, 0, 1, 1], [], []>} : vector<16x32xf32>, vector<32x64xf32>, vector<16x64xf32> -> vector<16x64xf32>
    %115 = vector.extract_strided_slice %114 {offsets = [0, 0], sizes = [16, 32], strides = [1, 1]} : vector<16x64xf32> to vector<16x32xf32>
    %116 = vector.shape_cast %115 : vector<16x32xf32> to vector<2x8x32xf32>
    %117 = vector.extract_strided_slice %114 {offsets = [0, 32], sizes = [16, 32], strides = [1, 1]} : vector<16x64xf32> to vector<16x32xf32>
    %118 = vector.shape_cast %117 : vector<16x32xf32> to vector<2x8x32xf32>
    %c0_34 = arith.constant 0 : index
    %c0_35 = arith.constant 0 : index
    %119 = vector.load %arg8[%c0_34, %c0_35] : memref<32x32xf32, #tpu.memory_space<vmem>>, vector<32x32xf32>
    %120 = vector.shape_cast %112 : vector<2x8x32xf32> to vector<2x1x8x32xf32>
    %121 = vector.shape_cast %120 : vector<2x1x8x32xf32> to vector<2x1x8x32xf32>
    %122 = vector.broadcast %121 : vector<2x1x8x32xf32> to vector<2x4x8x32xf32>
    %123 = vector.shape_cast %122 : vector<2x4x8x32xf32> to vector<2x32x32xf32>
    %124 = vector.shape_cast %13 : vector<32x32xf32> to vector<1x32x32xf32>
    %125 = vector.broadcast %124 : vector<1x32x32xf32> to vector<2x32x32xf32>
    %126 = arith.mulf %123, %125 : vector<2x32x32xf32>
    "tpu.trace_start"() <{level = 10 : i32, message = "brc,bkc->brk"}> : () -> ()
    %cst_36 = arith.constant dense<0.000000e+00> : vector<2x32x8xf32>
    %127 = tpu.matmul %126, %116, %cst_36 {dimension_numbers = #tpu.dot_dimension_numbers<[2], [2], [1], [1], [0, 0, 0, 1, 1, 1], [0], [0]>} : vector<2x32x32xf32>, vector<2x8x32xf32>, vector<2x32x8xf32> -> vector<2x32x8xf32>
    %cst_37 = arith.constant -1.000000e+06 : f32
    "tpu.trace_stop"() : () -> ()
    %128 = vector.broadcast %cst_37 : f32 to vector<2x32x8xf32>
    %129 = arith.select %24, %127, %128 : vector<2x32x8xi1>, vector<2x32x8xf32>
    %cst_38 = arith.constant dense<0xFF800000> : vector<2x32xf32>
    %130 = vector.multi_reduction <maximumf>, %129, %cst_38 [2] : vector<2x32x8xf32> to vector<2x32xf32>
    %131 = vector.shape_cast %130 : vector<2x32xf32> to vector<2x32x1xf32>
    %132 = vector.broadcast %131 : vector<2x32x1xf32> to vector<2x32x8xf32>
    %133 = arith.subf %129, %132 : vector<2x32x8xf32>
    %134 = math.exp %133 : vector<2x32x8xf32>
    %cst_39 = arith.constant dense<0.000000e+00> : vector<2x32xf32>
    %135 = vector.multi_reduction <add>, %134, %cst_39 [2] : vector<2x32x8xf32> to vector<2x32xf32>
    %136 = vector.shape_cast %135 : vector<2x32xf32> to vector<2x32x1xf32>
    %137 = tpu.reciprocal %136 : vector<2x32x1xf32> -> vector<2x32x1xf32>
    %138 = vector.broadcast %137 : vector<2x32x1xf32> to vector<2x32x8xf32>
    %139 = arith.mulf %134, %138 : vector<2x32x8xf32>
    "tpu.trace_start"() <{level = 10 : i32, message = "brk,bkc->brc"}> : () -> ()
    %cst_40 = arith.constant dense<0.000000e+00> : vector<2x32x32xf32>
    %140 = tpu.matmul %139, %118, %cst_40 {dimension_numbers = #tpu.dot_dimension_numbers<[2], [1], [1], [2], [0, 0, 0, 1, 1, 2], [0], [0]>} : vector<2x32x8xf32>, vector<2x8x32xf32>, vector<2x32x32xf32> -> vector<2x32x32xf32>
    "tpu.trace_stop"() : () -> ()
    %141 = vector.shape_cast %13 : vector<32x32xf32> to vector<1x32x32xf32>
    %142 = vector.broadcast %141 : vector<1x32x32xf32> to vector<2x32x32xf32>
    %143 = arith.mulf %140, %142 : vector<2x32x32xf32>
    %144 = vector.shape_cast %143 : vector<2x32x32xf32> to vector<2x4x8x32xf32>
    %145 = vector.extract_strided_slice %144 {offsets = [0, 0, 0, 0], sizes = [2, 1, 8, 32], strides = [1, 1, 1, 1]} : vector<2x4x8x32xf32> to vector<2x1x8x32xf32>
    %146 = vector.shape_cast %145 : vector<2x1x8x32xf32> to vector<2x8x32xf32>
    %147 = vector.extract_strided_slice %144 {offsets = [0, 1, 0, 0], sizes = [2, 1, 8, 32], strides = [1, 1, 1, 1]} : vector<2x4x8x32xf32> to vector<2x1x8x32xf32>
    %148 = vector.shape_cast %147 : vector<2x1x8x32xf32> to vector<2x8x32xf32>
    %149 = arith.addf %146, %148 : vector<2x8x32xf32>
    %150 = vector.extract_strided_slice %144 {offsets = [0, 2, 0, 0], sizes = [2, 1, 8, 32], strides = [1, 1, 1, 1]} : vector<2x4x8x32xf32> to vector<2x1x8x32xf32>
    %151 = vector.shape_cast %150 : vector<2x1x8x32xf32> to vector<2x8x32xf32>
    %152 = arith.addf %149, %151 : vector<2x8x32xf32>
    %153 = vector.extract_strided_slice %144 {offsets = [0, 3, 0, 0], sizes = [2, 1, 8, 32], strides = [1, 1, 1, 1]} : vector<2x4x8x32xf32> to vector<2x1x8x32xf32>
    %154 = vector.shape_cast %153 : vector<2x1x8x32xf32> to vector<2x8x32xf32>
    %155 = arith.addf %152, %154 : vector<2x8x32xf32>
    %156 = vector.shape_cast %155 : vector<2x8x32xf32> to vector<16x32xf32>
    %cst_41 = arith.constant dense<0.000000e+00> : vector<16x32xf32>
    %157 = tpu.matmul %156, %119, %cst_41 {dimension_numbers = #tpu.dot_dimension_numbers<[1], [0], [0], [1], [0, 0, 1, 1], [], []>} : vector<16x32xf32>, vector<32x32xf32>, vector<16x32xf32> -> vector<16x32xf32>
    %158 = arith.addf %109, %157 : vector<16x32xf32>
    %cst_42 = arith.constant dense<0.000000e+00> : vector<16xf32>
    %159 = vector.multi_reduction <add>, %158, %cst_42 [1] : vector<16x32xf32> to vector<16xf32>
    %160 = vector.shape_cast %159 : vector<16xf32> to vector<16x1xf32>
    %cst_43 = arith.constant 3.200000e+01 : f32
    %161 = vector.broadcast %cst_43 : f32 to vector<16x1xf32>
    %162 = arith.divf %160, %161 : vector<16x1xf32>
    %163 = vector.broadcast %162 : vector<16x1xf32> to vector<16x32xf32>
    %164 = arith.subf %158, %163 : vector<16x32xf32>
    %165 = arith.mulf %164, %164 : vector<16x32xf32>
    %cst_44 = arith.constant dense<0.000000e+00> : vector<16xf32>
    %166 = vector.multi_reduction <add>, %165, %cst_44 [1] : vector<16x32xf32> to vector<16xf32>
    %167 = vector.shape_cast %166 : vector<16xf32> to vector<16x1xf32>
    %cst_45 = arith.constant 3.200000e+01 : f32
    %168 = vector.broadcast %cst_45 : f32 to vector<16x1xf32>
    %169 = arith.divf %167, %168 : vector<16x1xf32>
    %170 = vector.broadcast %162 : vector<16x1xf32> to vector<16x32xf32>
    %171 = arith.subf %158, %170 : vector<16x32xf32>
    %cst_46 = arith.constant 9.99999974E-6 : f32
    %172 = vector.broadcast %cst_46 : f32 to vector<16x1xf32>
    %173 = arith.addf %169, %172 : vector<16x1xf32>
    %174 = math.rsqrt %173 : vector<16x1xf32>
    %175 = vector.broadcast %174 : vector<16x1xf32> to vector<16x32xf32>
    %176 = arith.mulf %171, %175 : vector<16x32xf32>
    %177 = vector.broadcast %28 : vector<1x32xf32> to vector<16x32xf32>
    %178 = arith.mulf %176, %177 : vector<16x32xf32>
    %179 = vector.broadcast %29 : vector<1x32xf32> to vector<16x32xf32>
    %180 = arith.addf %178, %179 : vector<16x32xf32>
    %c0_47 = arith.constant 0 : index
    %c0_48 = arith.constant 0 : index
    %181 = vector.load %arg9[%c0_47, %c0_48] : memref<32x64xf32, #tpu.memory_space<vmem>>, vector<32x64xf32>
    %cst_49 = arith.constant dense<0.000000e+00> : vector<16x64xf32>
    %182 = tpu.matmul %180, %181, %cst_49 {dimension_numbers = #tpu.dot_dimension_numbers<[1], [0], [0], [1], [0, 0, 1, 1], [], []>} : vector<16x32xf32>, vector<32x64xf32>, vector<16x64xf32> -> vector<16x64xf32>
    %183 = vector.broadcast %32 : vector<1x64xf32> to vector<16x64xf32>
    %184 = arith.addf %182, %183 : vector<16x64xf32>
    %cst_50 = arith.constant 0.000000e+00 : f32
    %185 = vector.broadcast %cst_50 : f32 to vector<16x64xf32>
    %186 = arith.maximumf %184, %185 : vector<16x64xf32>
    %c0_51 = arith.constant 0 : index
    %c0_52 = arith.constant 0 : index
    %187 = vector.load %arg10[%c0_51, %c0_52] : memref<64x32xf32, #tpu.memory_space<vmem>>, vector<64x32xf32>
    %cst_53 = arith.constant dense<0.000000e+00> : vector<16x32xf32>
    %188 = tpu.matmul %186, %187, %cst_53 {dimension_numbers = #tpu.dot_dimension_numbers<[1], [0], [0], [1], [0, 0, 1, 1], [], []>} : vector<16x64xf32>, vector<64x32xf32>, vector<16x32xf32> -> vector<16x32xf32>
    %189 = vector.broadcast %33 : vector<1x32xf32> to vector<16x32xf32>
    %190 = arith.addf %188, %189 : vector<16x32xf32>
    %191 = arith.addf %180, %190 : vector<16x32xf32>
    %cst_54 = arith.constant dense<0.000000e+00> : vector<16xf32>
    %192 = vector.multi_reduction <add>, %191, %cst_54 [1] : vector<16x32xf32> to vector<16xf32>
    %193 = vector.shape_cast %192 : vector<16xf32> to vector<16x1xf32>
    %cst_55 = arith.constant 3.200000e+01 : f32
    %194 = vector.broadcast %cst_55 : f32 to vector<16x1xf32>
    %195 = arith.divf %193, %194 : vector<16x1xf32>
    %196 = vector.broadcast %195 : vector<16x1xf32> to vector<16x32xf32>
    %197 = arith.subf %191, %196 : vector<16x32xf32>
    %198 = arith.mulf %197, %197 : vector<16x32xf32>
    %cst_56 = arith.constant dense<0.000000e+00> : vector<16xf32>
    %199 = vector.multi_reduction <add>, %198, %cst_56 [1] : vector<16x32xf32> to vector<16xf32>
    %200 = vector.shape_cast %199 : vector<16xf32> to vector<16x1xf32>
    %cst_57 = arith.constant 3.200000e+01 : f32
    %201 = vector.broadcast %cst_57 : f32 to vector<16x1xf32>
    %202 = arith.divf %200, %201 : vector<16x1xf32>
    %203 = vector.broadcast %195 : vector<16x1xf32> to vector<16x32xf32>
    %204 = arith.subf %191, %203 : vector<16x32xf32>
    %cst_58 = arith.constant 9.99999974E-6 : f32
    %205 = vector.broadcast %cst_58 : f32 to vector<16x1xf32>
    %206 = arith.addf %202, %205 : vector<16x1xf32>
    %207 = math.rsqrt %206 : vector<16x1xf32>
    %208 = vector.broadcast %207 : vector<16x1xf32> to vector<16x32xf32>
    %209 = arith.mulf %204, %208 : vector<16x32xf32>
    %210 = vector.broadcast %30 : vector<1x32xf32> to vector<16x32xf32>
    %211 = arith.mulf %209, %210 : vector<16x32xf32>
    %212 = vector.broadcast %31 : vector<1x32xf32> to vector<16x32xf32>
    %213 = arith.addf %211, %212 : vector<16x32xf32>
    %214 = vector.shape_cast %213 : vector<16x32xf32> to vector<2x8x32xf32>
    %c0_59 = arith.constant 0 : index
    %c0_60 = arith.constant 0 : index
    %c0_61 = arith.constant 0 : index
    %215 = vector.load %arg13[%c0_59, %c0_60, %c0_61] : memref<2x8x32xf32, #tpu.memory_space<vmem>>, vector<2x8x32xf32>
    tpu.vector_store %arg13[%c0_59, %c0_60, %c0_61], %214 {strides = array<i32>} : memref<2x8x32xf32, #tpu.memory_space<vmem>>, vector<2x8x32xf32>,
    return
  }
  func.func @transform_0(%arg0: i32) -> (i32, i32, i32) {
    %c0_i32 = arith.constant 0 : i32
    %c0_i32_0 = arith.constant 0 : i32
    %c0_i32_1 = arith.constant 0 : i32
    %c0_i32_2 = arith.constant 0 : i32
    return %c0_i32, %c0_i32_0, %c0_i32_1 : i32, i32, i32
  }
  func.func @transform_1(%arg0: i32) -> (i32, i32, i32) {
    %c0_i32 = arith.constant 0 : i32
    %c0_i32_0 = arith.constant 0 : i32
    %c0_i32_1 = arith.constant 0 : i32
    %c0_i32_2 = arith.constant 0 : i32
    return %c0_i32, %c0_i32_0, %c0_i32_1 : i32, i32, i32
  }
  func.func @transform_2(%arg0: i32) -> (i32, i32) {
    %c0_i32 = arith.constant 0 : i32
    %c0_i32_0 = arith.constant 0 : i32
    %c0_i32_1 = arith.constant 0 : i32
    return %c0_i32, %c0_i32_0 : i32, i32
  }
  func.func @transform_3(%arg0: i32) -> (i32, i32) {
    %c0_i32 = arith.constant 0 : i32
    %c0_i32_0 = arith.constant 0 : i32
    %c0_i32_1 = arith.constant 0 : i32
    return %c0_i32, %c0_i32_0 : i32, i32
  }
  func.func @transform_4(%arg0: i32) -> (i32, i32) {
    %c0_i32 = arith.constant 0 : i32
    %c0_i32_0 = arith.constant 0 : i32
    %c0_i32_1 = arith.constant 0 : i32
    return %c0_i32, %c0_i32_0 : i32, i32
  }
  func.func @transform_5(%arg0: i32) -> (i32, i32) {
    %c0_i32 = arith.constant 0 : i32
    %c0_i32_0 = arith.constant 0 : i32
    %c0_i32_1 = arith.constant 0 : i32
    return %c0_i32, %c0_i32_0 : i32, i32
  }
  func.func @transform_6(%arg0: i32) -> (i32, i32) {
    %c0_i32 = arith.constant 0 : i32
    %c0_i32_0 = arith.constant 0 : i32
    %c0_i32_1 = arith.constant 0 : i32
    return %c0_i32, %c0_i32_0 : i32, i32
  }
  func.func @transform_7(%arg0: i32) -> (i32, i32) {
    %c0_i32 = arith.constant 0 : i32
    %c0_i32_0 = arith.constant 0 : i32
    %c0_i32_1 = arith.constant 0 : i32
    return %c0_i32, %c0_i32_0 : i32, i32
  }
  func.func @transform_8(%arg0: i32) -> (i32, i32) {
    %c0_i32 = arith.constant 0 : i32
    %c0_i32_0 = arith.constant 0 : i32
    %c0_i32_1 = arith.constant 0 : i32
    return %c0_i32, %c0_i32_0 : i32, i32
  }
  func.func @transform_9(%arg0: i32) -> (i32, i32) {
    %c0_i32 = arith.constant 0 : i32
    %c0_i32_0 = arith.constant 0 : i32
    %c0_i32_1 = arith.constant 0 : i32
    return %c0_i32, %c0_i32_0 : i32, i32
  }
  func.func @transform_10(%arg0: i32) -> (i32, i32) {
    %c0_i32 = arith.constant 0 : i32
    %c0_i32_0 = arith.constant 0 : i32
    %c0_i32_1 = arith.constant 0 : i32
    return %c0_i32, %c0_i32_0 : i32, i32
  }
  func.func @transform_11(%arg0: i32) -> (i32, i32) {
    %c0_i32 = arith.constant 0 : i32
    %c0_i32_0 = arith.constant 0 : i32
    %c0_i32_1 = arith.constant 0 : i32
    return %c0_i32, %c0_i32_0 : i32, i32
  }
  func.func @transform_12(%arg0: i32) -> (i32, i32, i32) {
    %c0_i32 = arith.constant 0 : i32
    %c0_i32_0 = arith.constant 0 : i32
    %c0_i32_1 = arith.constant 0 : i32
    %c0_i32_2 = arith.constant 0 : i32
    return %c0_i32, %c0_i32_0, %c0_i32_1 : i32, i32, i32
  }
}

</mosaic_0001>

<bundles_post_ra>
// kernel: tpu_custom_call.1
= control target key start
LH: loop header
LB: loop body
LE: loop exit
PB: predicated region body
PF: predicated region fallthrough
CT: control target
= control target key end

     0   :  { %17 = vsyncpa [#allocation3], 0  ;;  %s2254_s0 = inlined_call_operand.hbm [shape: f32[2,8,32], index: 0, kind: input, shape index: {}]   ;;  %s2255_s1 = inlined_call_operand.hbm [shape: f32[2,8,32], index: 1, kind: input, shape index: {}]   ;;  %s2256_s2 = inlined_call_operand.vmem [shape: s32[2,1], index: 2, kind: input, shape index: {}]   ;;  %s2257_s3 = inlined_call_operand.vmem [shape: f32[32,96], index: 3, kind: input, shape index: {}]   ;;  %s2258_s4 = inlined_call_operand.vmem [shape: f32[32,32], index: 4, kind: input, shape index: {}]   ;;  %s2259_s5 = inlined_call_operand.vmem [shape: f32[32,32], index: 5, kind: input, shape index: {}]   ;;  %s2260_s6 = inlined_call_operand.hbm [shape: f32[32,64], index: 6, kind: input, shape index: {}]   ;;  %s2261_s7 = inlined_call_operand.hbm [shape: f32[32,32], index: 7, kind: input, shape index: {}]   ;;  %s2262_s8 = inlined_call_operand.hbm [shape: f32[32,64], index: 8, kind: input, shape index: {}]   ;;  %s2263_s9 = inlined_call_operand.vmem [shape: f32[64,32], index: 9, kind: input, shape index: {}]   ;;  %s2264_s10 = inlined_call_operand.vmem [shape: f32[6,32], index: 10, kind: input, shape index: {}]   ;;  %s2265_s11 = inlined_call_operand.vmem [shape: f32[2,64], index: 11, kind: input, shape index: {}]   ;;  %s2266_s12 = inlined_call_operand.hbm [shape: f32[2,8,32], index: 12, kind: output, shape index: {}]  }
   0x1   :  { %18 = vsyncpa [#allocation6], 0 }
   0x2   :  { %19 = vsyncpa [#allocation9], 0 }
   0x3   :  { %20 = vsyncpa [#allocation4], 0  ;;  %s38_s23 = sshll.u32 %s2255_s1, 4  ;;  %s1704_s24 = smov [#allocation5]   ;;  %s39_s23 = int_to_ptr.hbm [resolvable:$true] %s38_s23 }
   0x4   :  { %s40_s25 = sshll.u32 %s1704_s24, 4  ;;  %s72_s28 = sshll.u32 %s2261_s7, 4  ;;  %s41_s25 = int_to_ptr.vmem [resolvable:$true] %s40_s25  ;;  %s73_s28 = int_to_ptr.hbm [resolvable:$true] %s72_s28 }
   0x5   :  { %s1705_s29 = smov 128   ;;  %s1706_s30 = smov 8  }
   0x6   :  { %46 = dma.hbm_to_vmem [thread:$0]  %s39_s23, 256, %s41_s25, [#allocation6], %s1705_s29, %s1705_s29, %s1706_s30  }
   0x7   :  { %s1707_s13 = smov [#allocation8]   ;;  %s25_s1 = sshll.u32 %s2254_s0, 4  ;;  %s26_s1 = int_to_ptr.hbm [resolvable:$true] %s25_s1 }
   0x8   :  { %s74_s14 = sshll.u32 %s1707_s13, 4  ;;  %s59_s18 = sshll.u32 %s2260_s6, 4  ;;  %s75_s14 = int_to_ptr.vmem [resolvable:$true] %s74_s14  ;;  %s60_s18 = int_to_ptr.hbm [resolvable:$true] %s59_s18 }
   0x9   :  { %80 = dma.hbm_to_vmem [thread:$0]  %s73_s28, 512, %s75_s14, [#allocation9], %s1705_s29, %s1705_s29, %s1706_s30  }
   0xa   :  { %s1708_s19 = smov [#allocation2]   ;;  %s1709_s21 = smov [#allocation7]  }
   0xb   :  { %s27_s20 = sshll.u32 %s1708_s19, 4  ;;  %s61_s0 = sshll.u32 %s1709_s21, 4  ;;  %s28_s20 = int_to_ptr.vmem [resolvable:$true] %s27_s20  ;;  %s62_s0 = int_to_ptr.vmem [resolvable:$true] %s61_s0 }
   0xc   :  { %33 = dma.hbm_to_vmem [thread:$0]  %s26_s1, 256, %s28_s20, [#allocation3], %s1705_s29, %s1705_s29, %s1706_s30  }
   0xd   :  { %s85_s24 = sshll.u32 %s2262_s8, 4  ;;  %s1710_s6 = smov [#allocation10]   ;;  %s86_s24 = int_to_ptr.hbm [resolvable:$true] %s85_s24 }
   0xe   :  { %67 = dma.hbm_to_vmem [thread:$0]  %s60_s18, 512, %s62_s0, [#allocation6], %s1705_s29, %s1705_s29, %s1706_s30  }
   0xf   :  { %s87_s25 = sshll.u32 %s1710_s6, 4  ;;  %s88_s25 = int_to_ptr.vmem [resolvable:$true] %s87_s25 }
  0x10   :  { %93 = dma.hbm_to_vmem [thread:$0]  %s86_s24, 512, %s88_s25, [#allocation9], %s1705_s29, %s1705_s29, %s1706_s30  }
  0x11   :  { %1696 = dma.done.wait [#allocation3], 256  }
  0x12   :  { %1697 = vsyncadd [#allocation3], 4294967040 }
  0x13   :  { %1698 = dma.done.wait [#allocation6], 768  }
  0x14   :  { %1699 = vsyncadd [#allocation6], 4294966528 }
  0x15   :  { %1700 = dma.done.wait [#allocation9], 1024  }
  0x16   :  { %1701 = vsyncadd [#allocation9], 4294966272  ;;  %v167_v0 = vld [vmem:[%s2257_s3 + $0x18] sm:$0xff]  ;;  %v166_v1 = vld [vmem:[%s2257_s3 + $0x10] sm:$0xff]  ;;  %vm168_vm0 = vcmask 261120   ;;  %s1711_s1 = smov 96   ;;  %v120_v8 = vlaneseq }
  0x17   :  { %187 = vmatpush.msra.mxu0 %v167_v0  ;;  %v165_v2 = vld [vmem:[%s2257_s3 + $0x8] sm:$0xff]  ;;  %v164_v3 = vld [vmem:[%s2257_s3] sm:$0xff]  ;;  %v1712_v10 = vmov 0.0   ;;  %vm312_vm12 = vcmask 64512   ;;  %s1713_s3 = smov 64   ;;  %s1379_s28 = sshll.u32 %s2266_s12, 4  ;;  %s1380_s28 = int_to_ptr.hbm [resolvable:$true] %s1379_s28 }
  0x18   :  { %v1824_v4 = vld [vmem:[#allocation2] sm:$0xff]  ;;  %v1828_v5 = vld [vmem:[#allocation2 + $0x8] sm:$0xff]  ;;  %v1840_v9 = vand.u32 127, %v120_v8  ;;  %v143_v25 = vshrl.u32 %v120_v8, 7 }
  0x19   :  { %188 = vmatpush.msra.mxu0 %v166_v1 }
  0x1a   :  { %vm126_vm1 = vcmp.lt.s32.totalorder %v1840_v9, 8  ;;  %vm123_vm2 = vcmp.ge.s32.totalorder %v1840_v9, 8  ;;  %vm127_vm3 = vcmp.lt.s32.totalorder %v1840_v9, 16  ;;  %vm124_vm5 = vcmp.ge.s32.totalorder %v1840_v9, 16 }
  0x1b   :  { %189 = vmatpush.msra.mxu0 %v165_v2  ;;  %v1843_v11 = vsel %vm126_vm1, 1.0, %v1712_v10  ;;  %vm131_vm4 = vmand %vm123_vm2, %vm127_vm3  ;;  %vm128_vm6 = vcmp.lt.s32.totalorder %v1840_v9, 24  ;;  %vm125_vm8 = vcmp.ge.s32.totalorder %v1840_v9, 24  ;;  %vm129_vm9 = vcmp.lt.s32.totalorder %v1840_v9, 32 }
  0x1c   :  { %v1851_v14 = vsel %vm131_vm4, 1.0, %v1712_v10  ;;  %vm132_vm7 = vmand %vm124_vm5, %vm128_vm6  ;;  %vm1884_vm11 = vcmp.le.s32.totalorder %v1840_v9, %v143_v25 }
  0x1d   :  { %190 = vmatpush.msra.mxu0 %v164_v3  ;;  %v1862_v18 = vsel %vm132_vm7, 1.0, %v1712_v10  ;;  %vm133_vm10 = vmand %vm125_vm8, %vm129_vm9 }
  0x1e   :  { %1398 = vmatmul.msk.f32.vlgmr.msra.gmra.mxu0 %vm168_vm0, %v1824_v4  ;;  %v1872_v21 = vsel %vm133_vm10, 1.0, %v1712_v10 }
  0x26   :  { %1399 = vmatmul.msk.f32.gmra.mxu0 %vm168_vm0, %v1828_v5 }
  0x9b   :  { %v1832_v6 = vpop.f32.mrf.mxu0 }
  0x9c   :  { %211 = vrot.lane.b32.xlu0 %v1832_v6, %s1711_s1  ;;  %v202_v13 = vmul.f32 %v1843_v11, %v1832_v6  ;;  %v203_v16 = vmul.f32 %v1851_v14, %v1832_v6  ;;  %v204_v19 = vmul.f32 %v1862_v18, %v1832_v6  ;;  %v205_v22 = vmul.f32 %v1872_v21, %v1832_v6 }
  0xa3   :  { %v1836_v7 = vpop.f32.mrf.mxu0 }
  0xa4   :  { %257 = vrot.lane.b32.xlu0 %v1836_v7, %s1711_s1  ;;  %v206_v17 = vmul.f32 %v1843_v11, %v1836_v7  ;;  %v207_v20 = vmul.f32 %v1851_v14, %v1836_v7  ;;  %v208_v23 = vmul.f32 %v1862_v18, %v1836_v7  ;;  %v209_v24 = vmul.f32 %v1872_v21, %v1836_v7 }
 0x10e   :  { %v212_v12 = vpop.permute.xlu0 %211 }
 0x10f   :  { %1400 = vmatpush.xpose.msk.msra.mxu1 %vm168_vm0, %v212_v12 }
 0x112   :  { %1401 = vmatmul.msk.f32.vlgmr.msra.gmra.mxu1 %vm168_vm0, %v202_v13 }
 0x116   :  { %v258_v15 = vpop.permute.xlu0 %257 }
 0x117   :  { %1405 = vmatpush.xpose.msk.msra.mxu2 %vm168_vm0, %v258_v15 }
 0x11a   :  { %1402 = vmatmul.msk.f32.gmra.mxu1 %vm168_vm0, %v203_v16  ;;  %1406 = vmatmul.msk.f32.vlgmr.msra.gmra.mxu2 %vm168_vm0, %v206_v17 }
 0x122   :  { %1403 = vmatmul.msk.f32.gmra.mxu1 %vm168_vm0, %v204_v19  ;;  %1407 = vmatmul.msk.f32.gmra.mxu2 %vm168_vm0, %v207_v20 }
 0x12a   :  { %1404 = vmatmul.msk.f32.gmra.mxu1 %vm168_vm0, %v205_v22  ;;  %1408 = vmatmul.msk.f32.gmra.mxu2 %vm168_vm0, %v208_v23 }
 0x132   :  { %1409 = vmatmul.msk.f32.gmra.mxu2 %vm168_vm0, %v209_v24 }
 0x18f   :  { %v244_v27 = vpop.f32.mrf.mxu1 }
 0x190   :  { %v304_v28 = vsel %vm1884_vm11, %v244_v27, -1000000.0 }
 0x191   :  { %v313_v29 = vsel %vm312_vm12, %v304_v28, -inf }
 0x192   :  { %314 = vmax.xlane.f32.xlu1 %v313_v29 }
 0x197   :  { %v247_v30 = vpop.f32.mrf.mxu1 }
 0x198   :  { %v305_v31 = vsel %vm1884_vm11, %v247_v30, -1000000.0 }
 0x199   :  { %v316_v32 = vsel %vm312_vm12, %v305_v31, -inf }
 0x19a   :  { %317 = vmax.xlane.f32.xlu1 %v316_v32 }
 0x19d   :  { %v290_v33 = vpop.f32.mrf.mxu2 }
 0x19e   :  { %v308_v34 = vsel %vm1884_vm11, %v290_v33, -1000000.0 }
 0x19f   :  { %v250_v35 = vpop.f32.mrf.mxu1  ;;  %v325_v36 = vsel %vm312_vm12, %v308_v34, -inf }
 0x1a0   :  { %v306_v37 = vsel %vm1884_vm11, %v250_v35, -1000000.0  ;;  %326 = vmax.xlane.f32.xlu0 %v325_v36 }
 0x1a1   :  { %v319_v38 = vsel %vm312_vm12, %v306_v37, -inf }
 0x1a2   :  { %320 = vmax.xlane.f32.xlu2 %v319_v38 }
 0x1a5   :  { %v293_v39 = vpop.f32.mrf.mxu2 }
 0x1a6   :  { %v309_v40 = vsel %vm1884_vm11, %v293_v39, -1000000.0 }
 0x1a7   :  { %v253_v41 = vpop.f32.mrf.mxu1  ;;  %v328_v42 = vsel %vm312_vm12, %v309_v40, -inf }
 0x1a8   :  { %v307_v43 = vsel %vm1884_vm11, %v253_v41, -1000000.0  ;;  %329 = vmax.xlane.f32.xlu1 %v328_v42 }
 0x1a9   :  { %v322_v44 = vsel %vm312_vm12, %v307_v43, -inf }
 0x1aa   :  { %323 = vmax.xlane.f32.xlu2 %v322_v44 }
 0x1ad   :  { %v296_v45 = vpop.f32.mrf.mxu2 }
 0x1ae   :  { %v310_v46 = vsel %vm1884_vm11, %v296_v45, -1000000.0 }
 0x1af   :  { %v331_v47 = vsel %vm312_vm12, %v310_v46, -inf }
 0x1b2   :  { %332 = vmax.xlane.f32.xlu2 %v331_v47 }
 0x1b5   :  { %v299_v48 = vpop.f32.mrf.mxu2 }
 0x1b6   :  { %v311_v49 = vsel %vm1884_vm11, %v299_v48, -1000000.0 }
 0x1b7   :  { %v334_v50 = vsel %vm312_vm12, %v311_v49, -inf }
 0x1b8   :  { %335 = vmax.xlane.f32.xlu1 %v334_v50 }
 0x205   :  { %v315_v51 = vpop.xlane.xlu1 %314 }
 0x206   :  { %v337_v52 = vsub.f32 %v304_v28, %v315_v51 }
 0x208   :  { %v345_v53 = vmul.f32 1.442695, %v337_v52 }
 0x20a   :  { %1474 = vpow2.f32 %v345_v53 }
 0x20d   :  { %v318_v54 = vpop.xlane.xlu1 %317 }
 0x20e   :  { %v338_v55 = vsub.f32 %v305_v31, %v318_v54 }
 0x210   :  { %v1912_v56 = vpop.eup %1474  ;;  %v347_v57 = vmul.f32 1.442695, %v338_v55 }
 0x211   :  { %v361_v58 = vsel %vm312_vm12, %v1912_v56, 0.0 }
 0x212   :  { %1476 = vpow2.f32 %v347_v57  ;;  %362 = vadd.xlane.f32.xlu2 %v361_v58 }
 0x213   :  { %v327_v59 = vpop.xlane.xlu0 %326 }
 0x214   :  { %v341_v60 = vsub.f32 %v308_v34, %v327_v59 }
 0x215   :  { %v321_v61 = vpop.xlane.xlu2 %320 }
 0x216   :  { %v353_v62 = vmul.f32 1.442695, %v341_v60  ;;  %v339_v63 = vsub.f32 %v306_v37, %v321_v61 }
 0x218   :  { %v1916_v0 = vpop.eup %1476  ;;  %1478 = vpow2.f32 %v353_v62  ;;  %v349_v2 = vmul.f32 1.442695, %v339_v63 }
 0x219   :  { %v364_v1 = vsel %vm312_vm12, %v1916_v0, 0.0 }
 0x21a   :  { %365 = vadd.xlane.f32.xlu1 %v364_v1  ;;  %1480 = vpow2.f32 %v349_v2 }
 0x21b   :  { %v330_v3 = vpop.xlane.xlu1 %329 }
 0x21c   :  { %v342_v12 = vsub.f32 %v309_v40, %v330_v3 }
 0x21d   :  { %v324_v8 = vpop.xlane.xlu2 %323 }
 0x21e   :  { %v1920_v10 = vpop.eup %1478  ;;  %v355_v15 = vmul.f32 1.442695, %v342_v12  ;;  %v340_v19 = vsub.f32 %v307_v43, %v324_v8 }
 0x21f   :  { %v373_v13 = vsel %vm312_vm12, %v1920_v10, 0.0 }
 0x220   :  { %374 = vadd.xlane.f32.xlu2 %v373_v13  ;;  %v1924_v16 = vpop.eup %1480  ;;  %1482 = vpow2.f32 %v355_v15  ;;  %v351_v24 = vmul.f32 1.442695, %v340_v19 }
 0x221   :  { %v367_v22 = vsel %vm312_vm12, %v1924_v16, 0.0 }
 0x225   :  { %v333_v17 = vpop.xlane.xlu2 %332 }
 0x226   :  { %v343_v20 = vsub.f32 %v310_v46, %v333_v17  ;;  %v1928_v25 = vpop.eup %1482 }
 0x227   :  { %v376_v26 = vsel %vm312_vm12, %v1928_v25, 0.0 }
 0x228   :  { %v357_v23 = vmul.f32 1.442695, %v343_v20  ;;  %368 = vadd.xlane.f32.xlu2 %v367_v22 }
 0x22a   :  { %1484 = vpow2.f32 %v357_v23 }
 0x22b   :  { %1486 = vpow2.f32 %v351_v24  ;;  %v336_v31 = vpop.xlane.xlu1 %335 }
 0x22c   :  { %v344_v32 = vsub.f32 %v311_v49, %v336_v31 }
 0x22e   :  { %v359_v33 = vmul.f32 1.442695, %v344_v32 }
 0x230   :  { %v1932_v27 = vpop.eup %1484  ;;  %377 = vadd.xlane.f32.xlu2 %v376_v26  ;;  %1488 = vpow2.f32 %v359_v33 }
 0x231   :  { %v379_v28 = vsel %vm312_vm12, %v1932_v27, 0.0  ;;  %v1937_v29 = vpop.eup %1486 }
 0x232   :  { %380 = vadd.xlane.f32.xlu0 %v379_v28  ;;  %v370_v30 = vsel %vm312_vm12, %v1937_v29, 0.0  ;;  %v200_v28 = vld [vmem:[%s2258_s4 + $0x10] sm:$0xff] }
 0x233   :  { %505 = vrot.lane.b32.xlu1 %v1832_v6, %s1713_s3 }
 0x236   :  { %v1942_v34 = vpop.eup %1488 }
 0x237   :  { %v382_v35 = vsel %vm312_vm12, %v1942_v34, 0.0 }
 0x238   :  { %371 = vadd.xlane.f32.xlu2 %v370_v30 }
 0x250   :  { %549 = vrot.lane.b32.xlu2 %v1836_v7, %s1713_s3 }
 0x25d   :  { %383 = vadd.xlane.f32.xlu1 %v382_v35 }
 0x285   :  { %v363_v36 = vpop.xlane.xlu2 %362 }
 0x286   :  { %1490 = vrcp.f32 %v363_v36  ;;  %v396_v47 = vand.u32 2147483648, %v363_v36  ;;  %vm390_vm14 = vweird.f32 %v363_v36  ;;  %v394_v49 = vand.u32 2147483647, %v363_v36 }
 0x288   :  { %v397_v52 = vor.u32 1.1754944e-38, %v396_v47  ;;  %vm395_vm1 = vcmp.eq.f32.partialorder %v394_v49, 8.507059e+37 }
 0x28c   :  { %v1491_v6 = vpop.eup %1490 }
 0x28d   :  { %v366_v37 = vpop.xlane.xlu1 %365  ;;  %v386_v38 = vmul.f32 %v1491_v6, %v363_v36  ;;  %vm391_vm13 = vweird.f32 %v1491_v6 }
 0x28e   :  { %1492 = vrcp.f32 %v366_v37  ;;  %vm392_vm15 = vmor %vm390_vm14, %vm391_vm13  ;;  %vm404_vm3 = vweird.f32 %v366_v37  ;;  %v410_v60 = vand.u32 2147483648, %v366_v37  ;;  %v408_v3 = vand.u32 2147483647, %v366_v37 }
 0x28f   :  { %v387_v39 = vsub.f32 1.0, %v386_v38 }
 0x290   :  { %v411_v13 = vor.u32 1.1754944e-38, %v410_v60  ;;  %vm409_vm6 = vcmp.eq.f32.partialorder %v408_v3, 8.507059e+37 }
 0x291   :  { %v388_v7 = vmul.f32 %v1491_v6, %v387_v39 }
 0x293   :  { %v1946_v40 = vpop.xlane.xlu2 %374  ;;  %v389_v46 = vadd.f32 %v1491_v6, %v388_v7 }
 0x294   :  { %v1493_v41 = vpop.eup %1492  ;;  %1494 = vrcp.f32 %v1946_v40  ;;  %vm446_vm7 = vweird.f32 %v1946_v40  ;;  %v450_v20 = vand.u32 2147483647, %v1946_v40 }
 0x295   :  { %v400_v42 = vmul.f32 %v1493_v41, %v366_v37  ;;  %v393_v51 = vsel %vm392_vm15, %v1491_v6, %v389_v46  ;;  %vm405_vm2 = vweird.f32 %v1493_v41 }
 0x296   :  { %v398_v55 = vsel %vm395_vm1, %v397_v52, %v393_v51  ;;  %vm406_vm4 = vmor %vm404_vm3, %vm405_vm2  ;;  %vm451_vm13 = vcmp.eq.f32.partialorder %v450_v20, 8.507059e+37 }
 0x297   :  { %v401_v44 = vsub.f32 1.0, %v400_v42  ;;  %v497_v2 = vmul.f32 %v1912_v56, %v398_v55  ;;  %v452_v56 = vand.u32 2147483648, %v1946_v40 }
 0x299   :  { %v402_v50 = vmul.f32 %v1493_v41, %v401_v44  ;;  %v453_v6 = vor.u32 1.1754944e-38, %v452_v56 }
 0x29a   :  { %v1949_v43 = vpop.eup %1494 }
 0x29b   :  { %v1951_v45 = vpop.xlane.xlu2 %368  ;;  %v442_v48 = vmul.f32 %v1949_v43, %v1946_v40  ;;  %v403_v59 = vadd.f32 %v1493_v41, %v402_v50  ;;  %vm447_vm5 = vweird.f32 %v1949_v43 }
 0x29c   :  { %1496 = vrcp.f32 %v1951_v45  ;;  %vm1974_vm9 = vmor %vm446_vm7, %vm447_vm5  ;;  %vm418_vm10 = vweird.f32 %v1951_v45  ;;  %v424_v30 = vand.u32 2147483648, %v1951_v45  ;;  %v422_v31 = vand.u32 2147483647, %v1951_v45 }
 0x29d   :  { %v443_v53 = vsub.f32 1.0, %v442_v48  ;;  %v407_v12 = vsel %vm406_vm4, %v1493_v41, %v403_v59 }
 0x29e   :  { %v412_v19 = vsel %vm409_vm6, %v411_v13, %v407_v12  ;;  %v425_v39 = vor.u32 1.1754944e-38, %v424_v30  ;;  %vm423_vm14 = vcmp.eq.f32.partialorder %v422_v31, 8.507059e+37  ;;  %v199_v30 = vld [vmem:[%s2258_s4 + $0x8] sm:$0xff] }
 0x29f   :  { %v444_v61 = vmul.f32 %v1949_v43, %v443_v53  ;;  %v498_v35 = vmul.f32 %v1916_v0, %v412_v19 }
 0x2a1   :  { %v445_v15 = vadd.f32 %v1949_v43, %v444_v61 }
 0x2a2   :  { %v1497_v54 = vpop.eup %1496 }
 0x2a3   :  { %v414_v57 = vmul.f32 %v1497_v54, %v1951_v45  ;;  %v1957_v58 = vpop.xlane.xlu2 %377  ;;  %vm419_vm8 = vweird.f32 %v1497_v54  ;;  %v449_v36 = vsel %vm1974_vm9, %v1949_v43, %v445_v15 }
 0x2a4   :  { %1498 = vrcp.f32 %v1957_v58  ;;  %vm420_vm11 = vmor %vm418_vm10, %vm419_vm8  ;;  %v454_v40 = vsel %vm451_vm13, %v453_v6, %v449_v36  ;;  %v466_v0 = vand.u32 2147483648, %v1957_v58  ;;  %vm460_vm1 = vweird.f32 %v1957_v58 }
 0x2a5   :  { %v415_v62 = vsub.f32 1.0, %v414_v57  ;;  %v1961_v63 = vpop.xlane.xlu0 %380  ;;  %v506_v1 = vpop.permute.xlu1 %505  ;;  %v501_v46 = vmul.f32 %v1920_v10, %v454_v40  ;;  %v464_v47 = vand.u32 2147483647, %v1957_v58 }
 0x2a6   :  { %1500 = vrcp.f32 %v1961_v63  ;;  %535 = vmatpush.msra.mxu3 %v506_v1  ;;  %v467_v52 = vor.u32 1.1754944e-38, %v466_v0  ;;  %vm474_vm7 = vweird.f32 %v1961_v63 }
 0x2a7   :  { %v416_v8 = vmul.f32 %v1497_v54, %v415_v62  ;;  %1410 = vmatmul.msk.f32.vlgmr.msra.gmra.mxu3 %vm312_vm12, %v497_v2  ;;  %vm465_vm3 = vcmp.eq.f32.partialorder %v464_v47, 8.507059e+37  ;;  %v478_v62 = vand.u32 2147483647, %v1961_v63 }
 0x2a9   :  { %v417_v24 = vadd.f32 %v1497_v54, %v416_v8 }
 0x2aa   :  { %v1499_v17 = vpop.eup %1498 }
 0x2ab   :  { %v456_v22 = vmul.f32 %v1499_v17, %v1957_v58  ;;  %v372_v23 = vpop.xlane.xlu2 %371  ;;  %v421_v38 = vsel %vm420_vm11, %v1497_v54, %v417_v24  ;;  %vm461_vm15 = vweird.f32 %v1499_v17  ;;  %vm479_vm11 = vcmp.eq.f32.partialorder %v478_v62, 8.507059e+37 }
 0x2ac   :  { %v1972_v26 = vpop.eup %1500  ;;  %1502 = vrcp.f32 %v372_v23  ;;  %v426_v44 = vsel %vm423_vm14, %v425_v39, %v421_v38  ;;  %vm462_vm2 = vmor %vm460_vm1, %vm461_vm15  ;;  %v438_v53 = vand.u32 2147483648, %v372_v23  ;;  %v436_v10 = vand.u32 2147483647, %v372_v23 }
 0x2ad   :  { %v457_v32 = vsub.f32 1.0, %v456_v22  ;;  %v470_v33 = vmul.f32 %v1972_v26, %v1961_v63  ;;  %v499_v50 = vmul.f32 %v1924_v16, %v426_v44  ;;  %vm432_vm5 = vweird.f32 %v372_v23 }
 0x2ae   :  { %vm475_vm6 = vweird.f32 %v1972_v26  ;;  %v480_v16 = vand.u32 2147483648, %v1961_v63  ;;  %v439_v59 = vor.u32 1.1754944e-38, %v438_v53  ;;  %vm437_vm9 = vcmp.eq.f32.partialorder %v436_v10, 8.507059e+37 }
 0x2af   :  { %v458_v37 = vmul.f32 %v1499_v17, %v457_v32  ;;  %1411 = vmatmul.msk.f32.gmra.mxu3 %vm312_vm12, %v498_v35  ;;  %v471_v41 = vsub.f32 1.0, %v470_v33  ;;  %vm476_vm10 = vmor %vm474_vm7, %vm475_vm6 }
 0x2b0   :  { %v481_v8 = vor.u32 1.1754944e-38, %v480_v16 }
 0x2b1   :  { %v459_v7 = vadd.f32 %v1499_v17, %v458_v37  ;;  %v472_v48 = vmul.f32 %v1972_v26, %v471_v41 }
 0x2b2   :  { %v1503_v42 = vpop.eup %1502 }
 0x2b3   :  { %v428_v43 = vmul.f32 %v1503_v42, %v372_v23  ;;  %v550_v45 = vpop.permute.xlu2 %549  ;;  %v463_v51 = vsel %vm462_vm2, %v1499_v17, %v459_v7  ;;  %vm433_vm4 = vweird.f32 %v1503_v42  ;;  %v473_v58 = vadd.f32 %v1972_v26, %v472_v48 }
 0x2b4   :  { %579 = vmatpush.msrb.mxu0 %v550_v45  ;;  %v468_v55 = vsel %vm465_vm3, %v467_v52, %v463_v51  ;;  %vm434_vm8 = vmor %vm432_vm5, %vm433_vm4 }
 0x2b5   :  { %v429_v49 = vsub.f32 1.0, %v428_v43  ;;  %1414 = vmatmul.msk.f32.vlgmr.msrb.gmra.mxu0 %vm312_vm12, %v501_v46  ;;  %v502_v60 = vmul.f32 %v1928_v25, %v468_v55  ;;  %v477_v3 = vsel %vm476_vm10, %v1972_v26, %v473_v58  ;;  %v201_v26 = vld [vmem:[%s2258_s4 + $0x18] sm:$0xff] }
 0x2b6   :  { %v482_v12 = vsel %vm479_vm11, %v481_v8, %v477_v3  ;;  %625 = vmatpush.msrb.mxu3 %v201_v26 }
 0x2b7   :  { %v430_v54 = vmul.f32 %v1503_v42, %v429_v49  ;;  %1412 = vmatmul.msk.f32.gmra.mxu3 %vm312_vm12, %v499_v50  ;;  %v503_v13 = vmul.f32 %v1932_v27, %v482_v12 }
 0x2b8   :  { %626 = vmatpush.msrb.mxu3 %v200_v28 }
 0x2b9   :  { %v431_v57 = vadd.f32 %v1503_v42, %v430_v54 }
 0x2ba   :  { %627 = vmatpush.msrb.mxu3 %v199_v30 }
 0x2bb   :  { %v435_v61 = vsel %vm434_vm8, %v1503_v42, %v431_v57  ;;  %v1714_v57 = vmov 32.0  }
 0x2bc   :  { %v440_v1 = vsel %vm437_vm9, %v439_v59, %v435_v61 }
 0x2bd   :  { %1415 = vmatmul.msk.f32.gmra.mxu0 %vm312_vm12, %v502_v60  ;;  %v500_v2 = vmul.f32 %v1937_v29, %v440_v1 }
 0x2bf   :  { %1413 = vmatmul.msk.f32.gmra.mxu3 %vm312_vm12, %v500_v2 }
 0x2c5   :  { %1416 = vmatmul.msk.f32.gmra.mxu0 %vm312_vm12, %v503_v13 }
 0x2d0   :  { %v384_v25 = vpop.xlane.xlu1 %383 }
 0x2d1   :  { %1504 = vrcp.f32 %v384_v25  ;;  %v494_v56 = vand.u32 2147483648, %v384_v25  ;;  %v492_v29 = vand.u32 2147483647, %v384_v25  ;;  %vm488_vm14 = vweird.f32 %v384_v25 }
 0x2d2   :  { %1506 = vrcp.f32 %v1714_v57  ;;  %v145_v57 = vld [vmem:[%s2256_s2] sm:$0x3] }
 0x2d3   :  { %v495_v22 = vor.u32 1.1754944e-38, %v494_v56  ;;  %vm493_vm1 = vcmp.eq.f32.partialorder %v492_v29, 8.507059e+37  ;;  %v729_v56 = vld [vmem:[#allocation7 + $0x8] sm:$0xff]  ;;  %v698_v29 = vld [vmem:[%s2259_s5 + $0x18] sm:$0xff] }
 0x2d4   :  { %717 = vmatpush.msra.mxu0 %v698_v29  ;;  %1448 = vmatpush.msrb.mxu1 %v698_v29 }
 0x2d7   :  { %v1505_v63 = vpop.eup %1504 }
 0x2d8   :  { %v484_v15 = vmul.f32 %v1505_v63, %v384_v25  ;;  %vm489_vm13 = vweird.f32 %v1505_v63  ;;  %v1507_v58 = vpop.eup %1506 }
 0x2d9   :  { %vm490_vm15 = vmor %vm488_vm14, %vm489_vm13  ;;  %v645_v16 = vmul.f32 32.0, %v1507_v58  ;;  %vm649_vm2 = vweird.f32 %v1507_v58 }
 0x2da   :  { %v485_v17 = vsub.f32 1.0, %v484_v15  ;;  %v731_v15 = vld [vmem:[#allocation7 + $0x18] sm:$0xff] }
 0x2db   :  { %v646_v59 = vsub.f32 1.0, %v645_v16  ;;  %750 = vmatpush.msrb.mxu2 %v731_v15 }
 0x2dc   :  { %v486_v19 = vmul.f32 %v1505_v63, %v485_v17  ;;  %v730_v17 = vld [vmem:[#allocation7 + $0x10] sm:$0xff] }
 0x2dd   :  { %v647_v60 = vmul.f32 %v1507_v58, %v646_v59  ;;  %751 = vmatpush.msrb.mxu2 %v730_v17 }
 0x2de   :  { %v487_v20 = vadd.f32 %v1505_v63, %v486_v19  ;;  %v728_v19 = vld [vmem:[#allocation7] sm:$0xff] }
 0x2df   :  { %v648_v61 = vadd.f32 %v1507_v58, %v647_v60  ;;  %752 = vmatpush.msrb.mxu2 %v729_v56 }
 0x2e0   :  { %v491_v23 = vsel %vm490_vm15, %v1505_v63, %v487_v20  ;;  %v162_v20 = vld [vmem:[#allocation5] sm:$0xff] }
 0x2e1   :  { %v496_v24 = vsel %vm493_vm1, %v495_v22, %v491_v23  ;;  %v2036_v62 = vsel %vm649_vm2, %v1507_v58, %v648_v61  ;;  %753 = vmatpush.msrb.mxu2 %v728_v19  ;;  %v697_v22 = vld [vmem:[%s2259_s5 + $0x10] sm:$0xff]  ;;  %v696_v23 = vld [vmem:[%s2259_s5 + $0x8] sm:$0xff]  ;;  %v147_v58 = vperm.slane %v145_v57, 0  ;;  %v146_v61 = vrot.slane %v145_v57, 1 }
 0x2e2   :  { %v504_v27 = vmul.f32 %v1942_v34, %v496_v24  ;;  %v198_v34 = vld [vmem:[%s2258_s4] sm:$0xff]  ;;  %1422 = vmatmul.msk.f32.vlgmr.msrb.gmra.mxu2 %vm168_vm0, %v162_v20  ;;  %718 = vmatpush.msra.mxu0 %v697_v22 }
 0x2e3   :  { %628 = vmatpush.msrb.mxu3 %v198_v34  ;;  %v695_v24 = vld [vmem:[%s2259_s5] sm:$0xff]  ;;  %1449 = vmatpush.msrb.mxu1 %v697_v22 }
 0x2e4   :  { %1417 = vmatmul.msk.f32.gmra.mxu0 %vm312_vm12, %v504_v27  ;;  %v163_v27 = vld [vmem:[#allocation5 + $0x8] sm:$0xff] }
 0x2e5   :  { %719 = vmatpush.msra.mxu0 %v696_v23  ;;  %1450 = vmatpush.msrb.mxu1 %v696_v23 }
 0x2e7   :  { %720 = vmatpush.msra.mxu0 %v695_v24  ;;  %1451 = vmatpush.msrb.mxu1 %v695_v24 }
 0x2ea   :  { %1423 = vmatmul.msk.f32.gmra.mxu2 %vm168_vm0, %v163_v27 }
 0x32a   :  { %v537_v31 = vpop.f32.mrf.mxu3 }
 0x32b   :  { %v593_v36 = vmul.f32 %v1843_v11, %v537_v31 }
 0x332   :  { %v540_v32 = vpop.f32.mrf.mxu3  ;;  %v581_v41 = vpop.f32.mrf.mxu0 }
 0x333   :  { %v594_v35 = vmul.f32 %v1851_v14, %v540_v32  ;;  %v597_v43 = vmul.f32 %v1843_v11, %v581_v41 }
 0x335   :  { %v601_v37 = vadd.f32 %v594_v35, %v593_v36  ;;  %v2064_v35 = vld [vmem:[%s2264_s10] sm:$0x3f] }
 0x33a   :  { %v543_v33 = vpop.f32.mrf.mxu3  ;;  %v584_v42 = vpop.f32.mrf.mxu0 }
 0x33b   :  { %v595_v6 = vmul.f32 %v1862_v18, %v543_v33  ;;  %v598_v44 = vmul.f32 %v1851_v14, %v584_v42 }
 0x33d   :  { %v603_v39 = vadd.f32 %v601_v37, %v595_v6  ;;  %v602_v46 = vadd.f32 %v598_v44, %v597_v43  ;;  %v689_v37 = vperm.slane %v2064_v35, 0 }
 0x342   :  { %v546_v38 = vpop.f32.mrf.mxu3  ;;  %v587_v0 = vpop.f32.mrf.mxu0 }
 0x343   :  { %v596_v40 = vmul.f32 %v1872_v21, %v546_v38  ;;  %v599_v45 = vmul.f32 %v1862_v18, %v587_v0 }
 0x345   :  { %v605_v7 = vadd.f32 %v603_v39, %v596_v40  ;;  %v604_v48 = vadd.f32 %v602_v46, %v599_v45  ;;  %v692_v40 = vperm.slane %v2064_v35, 1 }
 0x347   :  { %1418 = vmatmul.msk.f32.vlgmr.msrb.gmra.mxu3 %vm168_vm0, %v605_v7 }
 0x361   :  { %v590_v47 = vpop.f32.mrf.mxu0 }
 0x362   :  { %v600_v49 = vmul.f32 %v1872_v21, %v590_v47 }
 0x364   :  { %v606_v50 = vadd.f32 %v604_v48, %v600_v49 }
 0x366   :  { %1419 = vmatmul.msk.f32.gmra.mxu3 %vm168_vm0, %v606_v50 }
 0x3ca   :  { %v630_v51 = vpop.f32.mrf.mxu3 }
 0x3cb   :  { %v636_v52 = vadd.f32 %v630_v51, %v1824_v4 }
 0x3cd   :  { %v638_v53 = vsel %vm168_vm0, %v636_v52, 0.0 }
 0x3ce   :  { %639 = vadd.xlane.f32.xlu0 %v638_v53 }
 0x3e9   :  { %v633_v54 = vpop.f32.mrf.mxu3 }
 0x3ea   :  { %v637_v10 = vadd.f32 %v633_v54, %v1828_v5  ;;  %v2078_v54 = vpop.f32.mrf.mxu2 }
 0x3eb   :  { %1424 = vmatpush.xpose.msk.msra.mxu3 %vm168_vm0, %v2078_v54 }
 0x3ec   :  { %v641_v55 = vsel %vm168_vm0, %v637_v10, 0.0 }
 0x3ed   :  { %642 = vadd.xlane.f32.xlu0 %v641_v55  ;;  %v1715_v55 = vmov 0  }
 0x3ee   :  { %1465 = vset.pattern.permute.xlu0 %v1715_v55  ;;  %1466 = vset.pattern.permute.xlu1 %v1715_v55 }
 0x441   :  { %v640_v4 = vpop.xlane.xlu0 %639 }
 0x442   :  { %v651_v1 = vmul.f32 %v2036_v62, %v640_v4  ;;  %v148_v4 = vperm.slane %v146_v61, 0 }
 0x444   :  { %v653_v2 = vsub.f32 %v636_v52, %v651_v1  ;;  %153 = vperm.xlu1 %1466, %v148_v4  }
 0x446   :  { %v655_v3 = vmul.f32 %v653_v2, %v653_v2 }
 0x448   :  { %v657_v5 = vsel %vm168_vm0, %v655_v3, 0.0 }
 0x449   :  { %658 = vadd.xlane.f32.xlu0 %v657_v5 }
 0x45d   :  { %150 = vperm.xlu0 %1465, %v147_v58  }
 0x460   :  { %v643_v8 = vpop.xlane.xlu0 %642 }
 0x461   :  { %v652_v12 = vmul.f32 %v2036_v62, %v643_v8 }
 0x463   :  { %v2041_v13 = vsub.f32 %v637_v10, %v652_v12  ;;  %v2082_v10 = vpop.f32.mrf.mxu2 }
 0x464   :  { %1429 = vmatpush.xpose.msk.msra.mxu1 %vm168_vm0, %v2082_v10 }
 0x465   :  { %v656_v25 = vmul.f32 %v2041_v13, %v2041_v13 }
 0x467   :  { %v660_v63 = vsel %vm168_vm0, %v656_v25, 0.0 }
 0x468   :  { %661 = vadd.xlane.f32.xlu2 %v660_v63 }
 0x4b6   :  { %v154_v20 = vpop.permute.xlu1 %153 }
 0x4b7   :  { %vm156_vm10 = vcmp.lt.s32.totalorder %v1840_v9, %v154_v20 }
 0x4bc   :  { %v659_v26 = vpop.xlane.xlu0 %658 }
 0x4bd   :  { %v663_v28 = vmul.f32 %v659_v26, %v2036_v62 }
 0x4bf   :  { %v665_v30 = vadd.f32 1e-05, %v663_v28 }
 0x4c1   :  { %1508 = vrsqrt.f32 %v665_v30  ;;  %vm673_vm4 = vweird.f32 %v665_v30 }
 0x4c7   :  { %v1509_v34 = vpop.eup %1508 }
 0x4c8   :  { %v668_v31 = vmul.f32 %v1509_v34, %v665_v30  ;;  %vm674_vm3 = vweird.f32 %v1509_v34 }
 0x4c9   :  { %vm675_vm5 = vmor %vm673_vm4, %vm674_vm3 }
 0x4ca   :  { %v669_v32 = vmul.f32 %v1509_v34, %v668_v31 }
 0x4cc   :  { %v670_v33 = vmul.f32 0.5, %v669_v32 }
 0x4ce   :  { %v671_v36 = vsub.f32 1.5, %v670_v33 }
 0x4cf   :  { %v151_v25 = vpop.permute.xlu0 %150 }
 0x4d0   :  { %v672_v6 = vmul.f32 %v1509_v34, %v671_v36  ;;  %vm155_vm9 = vcmp.lt.s32.totalorder %v1840_v9, %v151_v25 }
 0x4d2   :  { %v676_v38 = vsel %vm675_vm5, %v1509_v34, %v672_v6 }
 0x4d3   :  { %v687_v39 = vmul.f32 %v676_v38, %v653_v2 }
 0x4d5   :  { %v690_v41 = vmul.f32 %v689_v37, %v687_v39 }
 0x4d7   :  { %v2068_v7 = vadd.f32 %v692_v40, %v690_v41 }
 0x4d9   :  { %1420 = vmatmul.msk.f32.vlgmr.msra.gmra.mxu0 %vm168_vm0, %v2068_v7 }
 0x4db   :  { %v662_v42 = vpop.xlane.xlu2 %661 }
 0x4dc   :  { %v664_v0 = vmul.f32 %v662_v42, %v2036_v62 }
 0x4de   :  { %v666_v44 = vadd.f32 1e-05, %v664_v0 }
 0x4e0   :  { %1510 = vrsqrt.f32 %v666_v44  ;;  %vm683_vm7 = vweird.f32 %v666_v44 }
 0x4e6   :  { %v1511_v43 = vpop.eup %1510 }
 0x4e7   :  { %v678_v45 = vmul.f32 %v1511_v43, %v666_v44  ;;  %vm684_vm6 = vweird.f32 %v1511_v43 }
 0x4e8   :  { %vm685_vm8 = vmor %vm683_vm7, %vm684_vm6 }
 0x4e9   :  { %v679_v46 = vmul.f32 %v1511_v43, %v678_v45 }
 0x4eb   :  { %v680_v47 = vmul.f32 0.5, %v679_v46 }
 0x4ed   :  { %v681_v48 = vsub.f32 1.5, %v680_v47 }
 0x4ef   :  { %v682_v49 = vmul.f32 %v1511_v43, %v681_v48 }
 0x4f1   :  { %v686_v50 = vsel %vm685_vm8, %v1511_v43, %v682_v49 }
 0x4f2   :  { %v688_v51 = vmul.f32 %v686_v50, %v2041_v13 }
 0x4f4   :  { %v691_v52 = vmul.f32 %v689_v37, %v688_v51 }
 0x4f6   :  { %v2074_v53 = vadd.f32 %v692_v40, %v691_v52 }
 0x4f8   :  { %1421 = vmatmul.msk.f32.vlgmr.msrb.gmra.mxu1 %vm168_vm0, %v2074_v53 }
 0x556   :  { %v722_v16 = vpop.f32.mrf.mxu0 }
 0x557   :  { %v765_v59 = vmul.f32 %v1843_v11, %v722_v16  ;;  %v766_v60 = vmul.f32 %v1851_v14, %v722_v16  ;;  %v767_v1 = vmul.f32 %v1862_v18, %v722_v16  ;;  %v768_v2 = vmul.f32 %v1872_v21, %v722_v16 }
 0x559   :  { %1425 = vmatmul.msk.f32.vlgmr.msra.gmra.mxu3 %vm168_vm0, %v765_v59 }
 0x561   :  { %1426 = vmatmul.msk.f32.gmra.mxu3 %vm168_vm0, %v766_v60 }
 0x569   :  { %1427 = vmatmul.msk.f32.gmra.mxu3 %vm168_vm0, %v767_v1  ;;  %v1467_v1 = vpack.i.bf16 %v2082_v10, %v2078_v54 }
 0x571   :  { %1428 = vmatmul.msk.f32.gmra.mxu3 %vm168_vm0, %v768_v2 }
 0x575   :  { %v725_v3 = vpop.f32.mrf.mxu1 }
 0x576   :  { %v769_v5 = vmul.f32 %v1843_v11, %v725_v3  ;;  %v770_v8 = vmul.f32 %v1851_v14, %v725_v3  ;;  %v771_v12 = vmul.f32 %v1862_v18, %v725_v3  ;;  %v772_v13 = vmul.f32 %v1872_v21, %v725_v3 }
 0x578   :  { %1430 = vmatmul.msk.f32.vlgmr.msra.gmra.mxu1 %vm168_vm0, %v769_v5 }
 0x580   :  { %1431 = vmatmul.msk.f32.gmra.mxu1 %vm168_vm0, %v770_v8 }
 0x588   :  { %1432 = vmatmul.msk.f32.gmra.mxu1 %vm168_vm0, %v771_v12 }
 0x590   :  { %1433 = vmatmul.msk.f32.gmra.mxu1 %vm168_vm0, %v772_v13 }
 0x5dc   :  { %v805_v63 = vpop.f32.mrf.mxu3 }
 0x5dd   :  { %v861_v15 = vsel %vm155_vm9, %v805_v63, -1000000.0 }
 0x5de   :  { %v869_v17 = vsel %vm312_vm12, %v861_v15, -inf }
 0x5df   :  { %870 = vmax.xlane.f32.xlu2 %v869_v17 }
 0x5e4   :  { %v808_v56 = vpop.f32.mrf.mxu3 }
 0x5e5   :  { %v862_v19 = vsel %vm155_vm9, %v808_v56, -1000000.0 }
 0x5e6   :  { %v872_v29 = vsel %vm312_vm12, %v862_v19, -inf }
 0x5e7   :  { %873 = vmax.xlane.f32.xlu0 %v872_v29 }
 0x5ec   :  { %v811_v28 = vpop.f32.mrf.mxu3 }
 0x5ed   :  { %v863_v34 = vsel %vm155_vm9, %v811_v28, -1000000.0 }
 0x5ee   :  { %v875_v31 = vsel %vm312_vm12, %v863_v34, -inf }
 0x5f4   :  { %v814_v32 = vpop.f32.mrf.mxu3 }
 0x5f5   :  { %v849_v22 = vpop.f32.mrf.mxu1  ;;  %v864_v33 = vsel %vm155_vm9, %v814_v32, -1000000.0 }
 0x5f6   :  { %v865_v23 = vsel %vm156_vm10, %v849_v22, -1000000.0  ;;  %v878_v6 = vsel %vm312_vm12, %v864_v33, -inf }
 0x5f7   :  { %v881_v24 = vsel %vm312_vm12, %v865_v23, -inf }
 0x5f8   :  { %882 = vmax.xlane.f32.xlu1 %v881_v24 }
 0x5fd   :  { %v852_v27 = vpop.f32.mrf.mxu1 }
 0x5fe   :  { %v866_v26 = vsel %vm156_vm10, %v852_v27, -1000000.0 }
 0x5ff   :  { %v884_v30 = vsel %vm312_vm12, %v866_v26, -inf }
 0x600   :  { %885 = vmax.xlane.f32.xlu2 %v884_v30 }
 0x605   :  { %v855_v36 = vpop.f32.mrf.mxu1 }
 0x606   :  { %v867_v37 = vsel %vm156_vm10, %v855_v36, -1000000.0 }
 0x607   :  { %v887_v38 = vsel %vm312_vm12, %v867_v37, -inf }
 0x608   :  { %876 = vmax.xlane.f32.xlu2 %v875_v31 }
 0x60d   :  { %v858_v39 = vpop.f32.mrf.mxu1 }
 0x60e   :  { %v868_v40 = vsel %vm156_vm10, %v858_v39, -1000000.0 }
 0x60f   :  { %v890_v41 = vsel %vm312_vm12, %v868_v40, -inf }
 0x610   :  { %879 = vmax.xlane.f32.xlu2 %v878_v6 }
 0x618   :  { %888 = vmax.xlane.f32.xlu2 %v887_v38 }
 0x620   :  { %891 = vmax.xlane.f32.xlu2 %v890_v41 }
 0x652   :  { %v871_v42 = vpop.xlane.xlu2 %870 }
 0x653   :  { %v893_v0 = vsub.f32 %v861_v15, %v871_v42 }
 0x655   :  { %v901_v44 = vmul.f32 1.442695, %v893_v0 }
 0x657   :  { %1512 = vpow2.f32 %v901_v44 }
 0x65a   :  { %v874_v43 = vpop.xlane.xlu0 %873 }
 0x65b   :  { %v894_v45 = vsub.f32 %v862_v19, %v874_v43 }
 0x65d   :  { %v2131_v46 = vpop.eup %1512  ;;  %v903_v47 = vmul.f32 1.442695, %v894_v45 }
 0x65e   :  { %v917_v48 = vsel %vm312_vm12, %v2131_v46, 0.0 }
 0x65f   :  { %1514 = vpow2.f32 %v903_v47  ;;  %918 = vadd.xlane.f32.xlu0 %v917_v48 }
 0x665   :  { %v2135_v49 = vpop.eup %1514 }
 0x666   :  { %v920_v9 = vsel %vm312_vm12, %v2135_v49, 0.0 }
 0x667   :  { %921 = vadd.xlane.f32.xlu1 %v920_v9 }
 0x66b   :  { %v883_v50 = vpop.xlane.xlu1 %882 }
 0x66c   :  { %v897_v51 = vsub.f32 %v865_v23, %v883_v50 }
 0x66e   :  { %v909_v52 = vmul.f32 1.442695, %v897_v51 }
 0x670   :  { %1516 = vpow2.f32 %v909_v52 }
 0x673   :  { %v886_v55 = vpop.xlane.xlu2 %885 }
 0x674   :  { %v898_v57 = vsub.f32 %v866_v26, %v886_v55 }
 0x676   :  { %v2139_v58 = vpop.eup %1516  ;;  %v911_v16 = vmul.f32 1.442695, %v898_v57 }
 0x677   :  { %v929_v59 = vsel %vm312_vm12, %v2139_v58, 0.0 }
 0x678   :  { %1518 = vpow2.f32 %v911_v16  ;;  %930 = vadd.xlane.f32.xlu2 %v929_v59 }
 0x67b   :  { %v877_v60 = vpop.xlane.xlu2 %876 }
 0x67c   :  { %v895_v61 = vsub.f32 %v863_v34, %v877_v60 }
 0x67e   :  { %v2143_v4 = vpop.eup %1518  ;;  %v905_v2 = vmul.f32 1.442695, %v895_v61 }
 0x67f   :  { %v932_v3 = vsel %vm312_vm12, %v2143_v4, 0.0 }
 0x680   :  { %1520 = vpow2.f32 %v905_v2  ;;  %1468 = vrot.lane.b32.xlu1 %v1467_v1, %s1711_s1  ;;  %933 = vadd.xlane.f32.xlu2 %v932_v3 }
 0x683   :  { %v880_v5 = vpop.xlane.xlu2 %879 }
 0x684   :  { %v896_v8 = vsub.f32 %v864_v33, %v880_v5 }
 0x686   :  { %v2150_v12 = vpop.eup %1520  ;;  %v907_v13 = vmul.f32 1.442695, %v896_v8 }
 0x687   :  { %v923_v25 = vsel %vm312_vm12, %v2150_v12, 0.0 }
 0x688   :  { %1522 = vpow2.f32 %v907_v13  ;;  %924 = vadd.xlane.f32.xlu0 %v923_v25 }
 0x68b   :  { %v889_v63 = vpop.xlane.xlu2 %888 }
 0x68c   :  { %v899_v54 = vsub.f32 %v867_v37, %v889_v63 }
 0x68e   :  { %v2154_v10 = vpop.eup %1522  ;;  %v913_v15 = vmul.f32 1.442695, %v899_v54 }
 0x68f   :  { %v926_v17 = vsel %vm312_vm12, %v2154_v10, 0.0 }
 0x690   :  { %1524 = vpow2.f32 %v913_v15  ;;  %927 = vadd.xlane.f32.xlu0 %v926_v17 }
 0x693   :  { %v892_v56 = vpop.xlane.xlu2 %891 }
 0x694   :  { %v900_v19 = vsub.f32 %v868_v40, %v892_v56 }
 0x696   :  { %v2158_v29 = vpop.eup %1524  ;;  %v915_v20 = vmul.f32 1.442695, %v900_v19 }
 0x697   :  { %v935_v22 = vsel %vm312_vm12, %v2158_v29, 0.0 }
 0x698   :  { %1526 = vpow2.f32 %v915_v20  ;;  %936 = vadd.xlane.f32.xlu2 %v935_v22 }
 0x69e   :  { %v2162_v23 = vpop.eup %1526 }
 0x69f   :  { %v938_v24 = vsel %vm312_vm12, %v2162_v23, 0.0 }
 0x6a0   :  { %939 = vadd.xlane.f32.xlu0 %v938_v24 }
 0x6d2   :  { %v919_v27 = vpop.xlane.xlu0 %918 }
 0x6d3   :  { %1528 = vrcp.f32 %v919_v27  ;;  %v952_v37 = vand.u32 2147483648, %v919_v27  ;;  %vm946_vm13 = vweird.f32 %v919_v27  ;;  %v950_v39 = vand.u32 2147483647, %v919_v27 }
 0x6d5   :  { %v953_v42 = vor.u32 1.1754944e-38, %v952_v37  ;;  %vm951_vm15 = vcmp.eq.f32.partialorder %v950_v39, 8.507059e+37 }
 0x6d9   :  { %v1529_v28 = vpop.eup %1528 }
 0x6da   :  { %v922_v26 = vpop.xlane.xlu1 %921  ;;  %v942_v30 = vmul.f32 %v1529_v28, %v919_v27  ;;  %vm947_vm11 = vweird.f32 %v1529_v28 }
 0x6db   :  { %1530 = vrcp.f32 %v922_v26  ;;  %vm948_vm14 = vmor %vm946_vm13, %vm947_vm11  ;;  %v966_v47 = vand.u32 2147483648, %v922_v26  ;;  %vm960_vm2 = vweird.f32 %v922_v26  ;;  %v964_v55 = vand.u32 2147483647, %v922_v26 }
 0x6dc   :  { %v943_v34 = vsub.f32 1.0, %v942_v30 }
 0x6dd   :  { %v967_v60 = vor.u32 1.1754944e-38, %v966_v47  ;;  %vm965_vm5 = vcmp.eq.f32.partialorder %v964_v55, 8.507059e+37 }
 0x6de   :  { %v944_v32 = vmul.f32 %v1529_v28, %v943_v34 }
 0x6e0   :  { %v945_v36 = vadd.f32 %v1529_v28, %v944_v32 }
 0x6e1   :  { %v1531_v31 = vpop.eup %1530 }
 0x6e2   :  { %v956_v33 = vmul.f32 %v1531_v31, %v922_v26  ;;  %v949_v40 = vsel %vm948_vm14, %v1529_v28, %v945_v36  ;;  %vm961_vm1 = vweird.f32 %v1531_v31 }
 0x6e3   :  { %v954_v0 = vsel %vm951_vm15, %v953_v42, %v949_v40  ;;  %vm962_vm3 = vmor %vm960_vm2, %vm961_vm1 }
 0x6e4   :  { %v957_v6 = vsub.f32 1.0, %v956_v33  ;;  %v1053_v52 = vmul.f32 %v2131_v46, %v954_v0 }
 0x6e6   :  { %v958_v41 = vmul.f32 %v1531_v31, %v957_v6 }
 0x6e8   :  { %v959_v45 = vadd.f32 %v1531_v31, %v958_v41 }
 0x6ea   :  { %v963_v59 = vsel %vm962_vm3, %v1531_v31, %v959_v45 }
 0x6eb   :  { %v931_v38 = vpop.xlane.xlu2 %930  ;;  %v968_v3 = vsel %vm965_vm5, %v967_v60, %v963_v59 }
 0x6ec   :  { %1532 = vrcp.f32 %v931_v38  ;;  %v1008_v16 = vand.u32 2147483648, %v931_v38  ;;  %v1006_v1 = vand.u32 2147483647, %v931_v38  ;;  %vm1002_vm6 = vweird.f32 %v931_v38 }
 0x6ed   :  { %v1054_v54 = vmul.f32 %v2135_v49, %v968_v3 }
 0x6ee   :  { %v1009_v46 = vor.u32 1.1754944e-38, %v1008_v16  ;;  %vm1007_vm8 = vcmp.eq.f32.partialorder %v1006_v1, 8.507059e+37 }
 0x6f2   :  { %v1533_v44 = vpop.eup %1532  ;;  %v1469_v43 = vpop.permute.xlu1 %1468 }
 0x6f3   :  { %v998_v48 = vmul.f32 %v1533_v44, %v931_v38  ;;  %v1471_v9 = vunpack.i.h.bf16 %v1469_v43  ;;  %v1470_v50 = vunpack.i.l.bf16 %v1469_v43  ;;  %v934_v51 = vpop.xlane.xlu2 %933  ;;  %vm1003_vm4 = vweird.f32 %v1533_v44 }
 0x6f4   :  { %1534 = vrcp.f32 %v934_v51  ;;  %vm1004_vm7 = vmor %vm1002_vm6, %vm1003_vm4  ;;  %v1022_v56 = vand.u32 2147483648, %v934_v51  ;;  %v1020_v20 = vand.u32 2147483647, %v934_v51  ;;  %vm1016_vm10 = vweird.f32 %v934_v51 }
 0x6f5   :  { %v999_v57 = vsub.f32 1.0, %v998_v48  ;;  %1091 = vmatpush.msra.mxu2 %v1470_v50  ;;  %1135 = vmatpush.msrb.mxu0 %v1471_v9 }
 0x6f6   :  { %1434 = vmatmul.msk.f32.vlgmr.msra.gmra.mxu2 %vm312_vm12, %v1053_v52  ;;  %v1023_v27 = vor.u32 1.1754944e-38, %v1022_v56  ;;  %vm1021_vm13 = vcmp.eq.f32.partialorder %v1020_v20, 8.507059e+37  ;;  %v763_v20 = vld [vmem:[#allocation8 + $0x10] sm:$0xff] }
 0x6f7   :  { %v1000_v61 = vmul.f32 %v1533_v44, %v999_v57 }
 0x6f9   :  { %v1001_v2 = vadd.f32 %v1533_v44, %v1000_v61 }
 0x6fa   :  { %v1535_v5 = vpop.eup %1534 }
 0x6fb   :  { %v1005_v8 = vsel %vm1004_vm7, %v1533_v44, %v1001_v2  ;;  %v1012_v13 = vmul.f32 %v1535_v5, %v934_v51  ;;  %v925_v25 = vpop.xlane.xlu0 %924  ;;  %vm1017_vm9 = vweird.f32 %v1535_v5 }
 0x6fc   :  { %v1010_v63 = vsel %vm1007_vm8, %v1009_v46, %v1005_v8  ;;  %1536 = vrcp.f32 %v925_v25  ;;  %vm1018_vm11 = vmor %vm1016_vm10, %vm1017_vm9  ;;  %v980_v31 = vand.u32 2147483648, %v925_v25  ;;  %v978_v33 = vand.u32 2147483647, %v925_v25 }
 0x6fd   :  { %v1013_v15 = vsub.f32 1.0, %v1012_v13  ;;  %v1057_v17 = vmul.f32 %v2139_v58, %v1010_v63  ;;  %vm974_vm15 = vweird.f32 %v925_v25 }
 0x6fe   :  { %1435 = vmatmul.msk.f32.gmra.mxu2 %vm312_vm12, %v1054_v54  ;;  %v981_v37 = vor.u32 1.1754944e-38, %v980_v31  ;;  %vm979_vm2 = vcmp.eq.f32.partialorder %v978_v33, 8.507059e+37 }
 0x6ff   :  { %v1014_v19 = vmul.f32 %v1535_v5, %v1013_v15  ;;  %1438 = vmatmul.msk.f32.vlgmr.msrb.gmra.mxu0 %vm312_vm12, %v1057_v17 }
 0x701   :  { %v1015_v22 = vadd.f32 %v1535_v5, %v1014_v19  ;;  %v764_v19 = vld [vmem:[#allocation8 + $0x18] sm:$0xff] }
 0x702   :  { %v1537_v24 = vpop.eup %1536  ;;  %1181 = vmatpush.msrb.mxu3 %v764_v19 }
 0x703   :  { %v970_v26 = vmul.f32 %v1537_v24, %v925_v25  ;;  %v928_v28 = vpop.xlane.xlu0 %927  ;;  %v1019_v30 = vsel %vm1018_vm11, %v1535_v5, %v1015_v22  ;;  %vm975_vm14 = vweird.f32 %v1537_v24  ;;  %v761_v22 = vld [vmem:[#allocation8] sm:$0xff] }
 0x704   :  { %1538 = vrcp.f32 %v928_v28  ;;  %v1024_v49 = vsel %vm1021_vm13, %v1023_v27, %v1019_v30  ;;  %vm976_vm1 = vmor %vm974_vm15, %vm975_vm14  ;;  %v994_v0 = vand.u32 2147483648, %v928_v28  ;;  %v992_v43 = vand.u32 2147483647, %v928_v28  ;;  %1182 = vmatpush.msrb.mxu3 %v763_v20 }
 0x705   :  { %v971_v58 = vsub.f32 1.0, %v970_v26  ;;  %v1058_v34 = vmul.f32 %v2143_v4, %v1024_v49  ;;  %vm988_vm4 = vweird.f32 %v928_v28 }
 0x706   :  { %v995_v48 = vor.u32 1.1754944e-38, %v994_v0  ;;  %vm993_vm6 = vcmp.eq.f32.partialorder %v992_v43, 8.507059e+37 }
 0x707   :  { %v972_v32 = vmul.f32 %v1537_v24, %v971_v58  ;;  %1439 = vmatmul.msk.f32.gmra.mxu0 %vm312_vm12, %v1058_v34 }
 0x709   :  { %v973_v36 = vadd.f32 %v1537_v24, %v972_v32 }
 0x70a   :  { %v1539_v6 = vpop.eup %1538 }
 0x70b   :  { %v984_v38 = vmul.f32 %v1539_v6, %v928_v28  ;;  %v937_v39 = vpop.xlane.xlu2 %936  ;;  %v977_v40 = vsel %vm976_vm1, %v1537_v24, %v973_v36  ;;  %vm989_vm3 = vweird.f32 %v1539_v6 }
 0x70c   :  { %1540 = vrcp.f32 %v937_v39  ;;  %v982_v41 = vsel %vm979_vm2, %v981_v37, %v977_v40  ;;  %vm990_vm5 = vmor %vm988_vm4, %vm989_vm3  ;;  %v1036_v57 = vand.u32 2147483648, %v937_v39  ;;  %v1034_v59 = vand.u32 2147483647, %v937_v39 }
 0x70d   :  { %v985_v42 = vsub.f32 1.0, %v984_v38  ;;  %v1055_v4 = vmul.f32 %v2150_v12, %v982_v41  ;;  %vm1030_vm8 = vweird.f32 %v937_v39 }
 0x70e   :  { %v1037_v1 = vor.u32 1.1754944e-38, %v1036_v57  ;;  %vm1035_vm10 = vcmp.eq.f32.partialorder %v1034_v59, 8.507059e+37  ;;  %v1246_v57 = vld [vmem:[#allocation10 + $0x10] sm:$0xff]  ;;  %v1244_v59 = vld [vmem:[#allocation10] sm:$0xff] }
 0x70f   :  { %v986_v44 = vmul.f32 %v1539_v6, %v985_v42  ;;  %1436 = vmatmul.msk.f32.gmra.mxu2 %vm312_vm12, %v1055_v4 }
 0x711   :  { %v987_v45 = vadd.f32 %v1539_v6, %v986_v44 }
 0x712   :  { %v1541_v47 = vpop.eup %1540 }
 0x713   :  { %v1026_v9 = vmul.f32 %v1541_v47, %v937_v39  ;;  %v940_v50 = vpop.xlane.xlu0 %939  ;;  %v991_v51 = vsel %vm990_vm5, %v1539_v6, %v987_v45  ;;  %vm1031_vm7 = vweird.f32 %v1541_v47 }
 0x714   :  { %1542 = vrcp.f32 %v940_v50  ;;  %v996_v52 = vsel %vm993_vm6, %v995_v48, %v991_v51  ;;  %vm1032_vm9 = vmor %vm1030_vm8, %vm1031_vm7  ;;  %v1050_v13 = vand.u32 2147483648, %v940_v50  ;;  %v1048_v25 = vand.u32 2147483647, %v940_v50 }
 0x715   :  { %v1027_v55 = vsub.f32 1.0, %v1026_v9  ;;  %v1056_v12 = vmul.f32 %v2154_v10, %v996_v52  ;;  %vm1044_vm13 = vweird.f32 %v940_v50  ;;  %vm1289_vm6 = vcmask 523264  }
 0x716   :  { %v1051_v54 = vor.u32 1.1754944e-38, %v1050_v13  ;;  %vm1049_vm15 = vcmp.eq.f32.partialorder %v1048_v25, 8.507059e+37 }
 0x717   :  { %v1028_v16 = vmul.f32 %v1541_v47, %v1027_v55  ;;  %1437 = vmatmul.msk.f32.gmra.mxu2 %vm312_vm12, %v1056_v12 }
 0x719   :  { %v1029_v60 = vadd.f32 %v1541_v47, %v1028_v16  ;;  %v1245_v16 = vld [vmem:[#allocation10 + $0x8] sm:$0xff] }
 0x71a   :  { %v1543_v61 = vpop.eup %1542 }
 0x71b   :  { %v1040_v2 = vmul.f32 %v1543_v61, %v940_v50  ;;  %v1033_v3 = vsel %vm1032_vm9, %v1541_v47, %v1029_v60  ;;  %vm1045_vm11 = vweird.f32 %v1543_v61 }
 0x71c   :  { %v1038_v5 = vsel %vm1035_vm10, %v1037_v1, %v1033_v3  ;;  %vm1046_vm14 = vmor %vm1044_vm13, %vm1045_vm11  ;;  %v1286_v3 = vld [vmem:[%s2263_s9 + $0x30] sm:$0xff] }
 0x71d   :  { %v1041_v46 = vsub.f32 1.0, %v1040_v2  ;;  %v1059_v8 = vmul.f32 %v2158_v29, %v1038_v5  ;;  %v762_v29 = vld [vmem:[#allocation8 + $0x8] sm:$0xff]  ;;  %v1287_v2 = vld [vmem:[%s2263_s9 + $0x38] sm:$0xff] }
 0x71e   :  { %1183 = vmatpush.msrb.mxu3 %v762_v29  ;;  %1304 = vmatpush.msrb.mxu2 %v1287_v2  ;;  %v1285_v5 = vld [vmem:[%s2263_s9 + $0x28] sm:$0xff] }
 0x71f   :  { %v1042_v10 = vmul.f32 %v1543_v61, %v1041_v46  ;;  %1440 = vmatmul.msk.f32.gmra.mxu0 %vm312_vm12, %v1059_v8 }
 0x720   :  { %1184 = vmatpush.msrb.mxu3 %v761_v22  ;;  %1305 = vmatpush.msrb.mxu2 %v1286_v3  ;;  %v1238_v22 = vperm.slane %v2064_v35, 2 }
 0x721   :  { %v1043_v63 = vadd.f32 %v1543_v61, %v1042_v10  ;;  %v1284_v10 = vld [vmem:[%s2263_s9 + $0x20] sm:$0xff] }
 0x722   :  { %1306 = vmatpush.msrb.mxu2 %v1285_v5 }
 0x723   :  { %v1047_v15 = vsel %vm1046_vm14, %v1543_v61, %v1043_v63 }
 0x724   :  { %v1052_v17 = vsel %vm1049_vm15, %v1051_v54, %v1047_v15  ;;  %v1283_v54 = vld [vmem:[%s2263_s9 + $0x18] sm:$0xff]  ;;  %1307 = vmatpush.msrb.mxu2 %v1284_v10 }
 0x725   :  { %v1060_v56 = vmul.f32 %v2162_v23, %v1052_v17  ;;  %v1282_v17 = vld [vmem:[%s2263_s9 + $0x10] sm:$0xff] }
 0x726   :  { %1308 = vmatpush.msrb.mxu2 %v1283_v54 }
 0x727   :  { %1441 = vmatmul.msk.f32.gmra.mxu0 %vm312_vm12, %v1060_v56 }
 0x728   :  { %1309 = vmatpush.msrb.mxu2 %v1282_v17 }
 0x779   :  { %v1093_v24 = vpop.f32.mrf.mxu2 }
 0x77a   :  { %v1149_v58 = vmul.f32 %v1843_v11, %v1093_v24 }
 0x77c   :  { %v1137_v27 = vpop.f32.mrf.mxu0 }
 0x77d   :  { %v1153_v38 = vmul.f32 %v1843_v11, %v1137_v27 }
 0x781   :  { %v1096_v26 = vpop.f32.mrf.mxu2 }
 0x782   :  { %v1150_v49 = vmul.f32 %v1851_v14, %v1096_v26 }
 0x784   :  { %v1140_v30 = vpop.f32.mrf.mxu0  ;;  %v1157_v34 = vadd.f32 %v1150_v49, %v1149_v58 }
 0x785   :  { %v1154_v37 = vmul.f32 %v1851_v14, %v1140_v30 }
 0x787   :  { %v1158_v40 = vadd.f32 %v1154_v37, %v1153_v38  ;;  %v1281_v37 = vld [vmem:[%s2263_s9 + $0x8] sm:$0xff]  ;;  %v1280_v38 = vld [vmem:[%s2263_s9] sm:$0xff]  ;;  %s1716_s9 = smov [#allocation11]  }
 0x788   :  { %1310 = vmatpush.msrb.mxu2 %v1281_v37 }
 0x78a   :  { %1311 = vmatpush.msrb.mxu2 %v1280_v38 }
 0x792   :  { %v1099_v28 = vpop.f32.mrf.mxu2 }
 0x793   :  { %v1151_v23 = vmul.f32 %v1862_v18, %v1099_v28  ;;  %v1241_v28 = vperm.slane %v2064_v35, 3 }
 0x795   :  { %v1159_v32 = vadd.f32 %v1157_v34, %v1151_v23 }
 0x79a   :  { %v1102_v31 = vpop.f32.mrf.mxu2 }
 0x79b   :  { %v1152_v33 = vmul.f32 %v1872_v21, %v1102_v31 }
 0x79c   :  { %v1143_v36 = vpop.f32.mrf.mxu0 }
 0x79d   :  { %v1161_v6 = vadd.f32 %v1159_v32, %v1152_v33  ;;  %v1155_v39 = vmul.f32 %v1862_v18, %v1143_v36 }
 0x79f   :  { %1442 = vmatmul.msk.f32.vlgmr.msrb.gmra.mxu3 %vm168_vm0, %v1161_v6  ;;  %v1160_v42 = vadd.f32 %v1158_v40, %v1155_v39  ;;  %v1472_v39 = vld [vmem:[%s2265_s11] ss:$0 sm:$0xff] }
 0x7a4   :  { %v1146_v41 = vpop.f32.mrf.mxu0 }
 0x7a5   :  { %v1156_v4 = vmul.f32 %v1872_v21, %v1146_v41 }
 0x7a7   :  { %v1162_v0 = vadd.f32 %v1160_v42, %v1156_v4 }
 0x7a9   :  { %1443 = vmatmul.msk.f32.gmra.mxu3 %vm168_vm0, %v1162_v0 }
 0x822   :  { %v1186_v44 = vpop.f32.mrf.mxu3 }
 0x823   :  { %v1192_v43 = vadd.f32 %v1186_v44, %v2068_v7 }
 0x825   :  { %v1194_v45 = vsel %vm168_vm0, %v1192_v43, 0.0 }
 0x826   :  { %1195 = vadd.xlane.f32.xlu2 %v1194_v45 }
 0x82c   :  { %v1189_v14 = vpop.f32.mrf.mxu3 }
 0x82d   :  { %v1193_v47 = vadd.f32 %v1189_v14, %v2074_v53  ;;  %v1247_v53 = vld [vmem:[#allocation10 + $0x18] sm:$0xff] }
 0x82e   :  { %1267 = vmatpush.msrb.mxu1 %v1247_v53 }
 0x82f   :  { %v1197_v11 = vsel %vm168_vm0, %v1193_v47, 0.0 }
 0x830   :  { %1198 = vadd.xlane.f32.xlu0 %v1197_v11  ;;  %1268 = vmatpush.msrb.mxu1 %v1246_v57 }
 0x832   :  { %1269 = vmatpush.msrb.mxu1 %v1245_v16 }
 0x834   :  { %1270 = vmatpush.msrb.mxu1 %v1244_v59 }
 0x899   :  { %v1196_v18 = vpop.xlane.xlu2 %1195 }
 0x89a   :  { %v1200_v48 = vmul.f32 %v1196_v18, %v2036_v62 }
 0x89c   :  { %v1202_v9 = vsub.f32 %v1192_v43, %v1200_v48  ;;  %v1473_v43 = vld [vmem:[%s2265_s11 + $0x1] ss:$0 sm:$0xff]  ;;  %s1377_s11 = sshll.u32 %s1716_s9, 4  ;;  %s1378_s11 = int_to_ptr.vmem [resolvable:$true] %s1377_s11 }
 0x89e   :  { %v1204_v21 = vmul.f32 %v1202_v9, %v1202_v9 }
 0x8a0   :  { %v1206_v50 = vsel %vm168_vm0, %v1204_v21, 0.0 }
 0x8a1   :  { %1207 = vadd.xlane.f32.xlu1 %v1206_v50 }
 0x8a3   :  { %v1199_v51 = vpop.xlane.xlu0 %1198 }
 0x8a4   :  { %v1201_v7 = vmul.f32 %v1199_v51, %v2036_v62 }
 0x8a6   :  { %v1203_v52 = vsub.f32 %v1193_v47, %v1201_v7 }
 0x8a8   :  { %v1205_v55 = vmul.f32 %v1203_v52, %v1203_v52 }
 0x8aa   :  { %v1209_v12 = vsel %vm168_vm0, %v1205_v55, 0.0 }
 0x8ab   :  { %1210 = vadd.xlane.f32.xlu2 %v1209_v12 }
 0x914   :  { %v1208_v60 = vpop.xlane.xlu1 %1207 }
 0x915   :  { %v1212_v61 = vmul.f32 %v1208_v60, %v2036_v62 }
 0x917   :  { %v1214_v1 = vadd.f32 1e-05, %v1212_v61 }
 0x919   :  { %1544 = vrsqrt.f32 %v1214_v1  ;;  %vm1222_vm1 = vweird.f32 %v1214_v1 }
 0x91e   :  { %v1211_v46 = vpop.xlane.xlu2 %1210 }
 0x91f   :  { %v1545_v8 = vpop.eup %1544  ;;  %v1213_v13 = vmul.f32 %v1211_v46, %v2036_v62 }
 0x920   :  { %v1217_v25 = vmul.f32 %v1545_v8, %v1214_v1  ;;  %vm1223_vm12 = vweird.f32 %v1545_v8 }
 0x921   :  { %v1215_v63 = vadd.f32 1e-05, %v1213_v13  ;;  %vm1224_vm2 = vmor %vm1222_vm1, %vm1223_vm12 }
 0x922   :  { %v1218_v15 = vmul.f32 %v1545_v8, %v1217_v25 }
 0x923   :  { %1546 = vrsqrt.f32 %v1215_v63  ;;  %vm1232_vm4 = vweird.f32 %v1215_v63 }
 0x924   :  { %v1219_v56 = vmul.f32 0.5, %v1218_v15  ;;  %v1365_v15 = vperm.slane %v2064_v35, 4 }
 0x926   :  { %v1220_v19 = vsub.f32 1.5, %v1219_v56 }
 0x928   :  { %v1221_v20 = vmul.f32 %v1545_v8, %v1220_v19 }
 0x929   :  { %v1547_v29 = vpop.eup %1546 }
 0x92a   :  { %v1225_v24 = vsel %vm1224_vm2, %v1545_v8, %v1221_v20  ;;  %v1227_v27 = vmul.f32 %v1547_v29, %v1215_v63  ;;  %vm1233_vm3 = vweird.f32 %v1547_v29  ;;  %v1368_v20 = vperm.slane %v2064_v35, 5 }
 0x92b   :  { %v1236_v26 = vmul.f32 %v1225_v24, %v1202_v9  ;;  %vm1234_vm5 = vmor %vm1232_vm4, %vm1233_vm3 }
 0x92c   :  { %v1228_v30 = vmul.f32 %v1547_v29, %v1227_v27 }
 0x92d   :  { %v1239_v49 = vmul.f32 %v1238_v22, %v1236_v26 }
 0x92e   :  { %v1229_v58 = vmul.f32 0.5, %v1228_v30 }
 0x92f   :  { %v1242_v23 = vadd.f32 %v1241_v28, %v1239_v49 }
 0x930   :  { %v1230_v34 = vsub.f32 1.5, %v1229_v58 }
 0x931   :  { %1444 = vmatmul.msk.f32.vlgmr.msrb.gmra.mxu1 %vm168_vm0, %v1242_v23 }
 0x932   :  { %v1231_v31 = vmul.f32 %v1547_v29, %v1230_v34 }
 0x934   :  { %v1235_v32 = vsel %vm1234_vm5, %v1547_v29, %v1231_v31 }
 0x935   :  { %v1237_v33 = vmul.f32 %v1235_v32, %v1203_v52 }
 0x937   :  { %v1240_v36 = vmul.f32 %v1238_v22, %v1237_v33 }
 0x939   :  { %v1243_v6 = vadd.f32 %v1241_v28, %v1240_v36 }
 0x93b   :  { %1445 = vmatmul.msk.f32.gmra.mxu1 %vm168_vm0, %v1243_v6 }
 0x9ae   :  { %v1272_v40 = vpop.f32.mrf.mxu1 }
 0x9af   :  { %v1273_v41 = vadd.f32 %v1472_v39, %v1272_v40 }
 0x9b1   :  { %v1278_v42 = vmax.f32 %v1273_v41, 0.0 }
 0x9b3   :  { %1446 = vmatmul.msk.f32.vlgmr.msrb.gmra.mxu2 %vm1289_vm6, %v1278_v42 }
 0x9b8   :  { %v1275_v4 = vpop.f32.mrf.mxu1 }
 0x9b9   :  { %v1276_v0 = vadd.f32 %v1472_v39, %v1275_v4 }
 0x9bb   :  { %v1279_v44 = vmax.f32 %v1276_v0, 0.0 }
 0x9bd   :  { %1447 = vmatmul.msk.f32.gmra.mxu2 %vm1289_vm6, %v1279_v44 }
 0xa36   :  { %v1313_v45 = vpop.f32.mrf.mxu2 }
 0xa37   :  { %v1314_v14 = vadd.f32 %v1473_v43, %v1313_v45 }
 0xa39   :  { %v1319_v47 = vadd.f32 %v1314_v14, %v1242_v23 }
 0xa3b   :  { %v1321_v11 = vsel %vm168_vm0, %v1319_v47, 0.0 }
 0xa3c   :  { %1322 = vadd.xlane.f32.xlu0 %v1321_v11 }
 0xa40   :  { %v1316_v18 = vpop.f32.mrf.mxu2 }
 0xa41   :  { %v1317_v48 = vadd.f32 %v1473_v43, %v1316_v18 }
 0xa43   :  { %v1320_v9 = vadd.f32 %v1317_v48, %v1243_v6 }
 0xa45   :  { %v1324_v21 = vsel %vm168_vm0, %v1320_v9, 0.0 }
 0xa46   :  { %1325 = vadd.xlane.f32.xlu2 %v1324_v21 }
 0xaaf   :  { %v1323_v50 = vpop.xlane.xlu0 %1322 }
 0xab0   :  { %v1327_v51 = vmul.f32 %v1323_v50, %v2036_v62 }
 0xab2   :  { %v1329_v7 = vsub.f32 %v1319_v47, %v1327_v51 }
 0xab4   :  { %v1331_v52 = vmul.f32 %v1329_v7, %v1329_v7 }
 0xab6   :  { %v1333_v55 = vsel %vm168_vm0, %v1331_v52, 0.0 }
 0xab7   :  { %1334 = vadd.xlane.f32.xlu0 %v1333_v55 }
 0xab9   :  { %v1326_v12 = vpop.xlane.xlu2 %1325 }
 0xaba   :  { %v1328_v53 = vmul.f32 %v1326_v12, %v2036_v62 }
 0xabc   :  { %v1330_v57 = vsub.f32 %v1320_v9, %v1328_v53 }
 0xabe   :  { %v1332_v16 = vmul.f32 %v1330_v57, %v1330_v57 }
 0xac0   :  { %v1336_v59 = vsel %vm168_vm0, %v1332_v16, 0.0 }
 0xac1   :  { %1337 = vadd.xlane.f32.xlu2 %v1336_v59 }
 0xb2a   :  { %v1335_v60 = vpop.xlane.xlu0 %1334 }
 0xb2b   :  { %v1339_v61 = vmul.f32 %v1335_v60, %v2036_v62 }
 0xb2d   :  { %v1341_v1 = vadd.f32 1e-05, %v1339_v61 }
 0xb2f   :  { %1548 = vrsqrt.f32 %v1341_v1  ;;  %vm1349_vm8 = vweird.f32 %v1341_v1 }
 0xb34   :  { %v1338_v2 = vpop.xlane.xlu2 %1337 }
 0xb35   :  { %v1549_v3 = vpop.eup %1548  ;;  %v1340_v5 = vmul.f32 %v1338_v2, %v2036_v62 }
 0xb36   :  { %v1344_v46 = vmul.f32 %v1549_v3, %v1341_v1  ;;  %vm1350_vm7 = vweird.f32 %v1549_v3 }
 0xb37   :  { %v1342_v8 = vadd.f32 1e-05, %v1340_v5  ;;  %vm1351_vm9 = vmor %vm1349_vm8, %vm1350_vm7 }
 0xb38   :  { %v1345_v13 = vmul.f32 %v1549_v3, %v1344_v46 }
 0xb39   :  { %1550 = vrsqrt.f32 %v1342_v8  ;;  %vm1359_vm11 = vweird.f32 %v1342_v8 }
 0xb3a   :  { %v1346_v10 = vmul.f32 0.5, %v1345_v13 }
 0xb3c   :  { %v1347_v25 = vsub.f32 1.5, %v1346_v10 }
 0xb3e   :  { %v1348_v63 = vmul.f32 %v1549_v3, %v1347_v25 }
 0xb3f   :  { %v1551_v54 = vpop.eup %1550 }
 0xb40   :  { %v1352_v17 = vsel %vm1351_vm9, %v1549_v3, %v1348_v63  ;;  %v1354_v56 = vmul.f32 %v1551_v54, %v1342_v8  ;;  %vm1360_vm10 = vweird.f32 %v1551_v54 }
 0xb41   :  { %v1363_v19 = vmul.f32 %v1352_v17, %v1329_v7  ;;  %vm1361_vm13 = vmor %vm1359_vm11, %vm1360_vm10 }
 0xb42   :  { %v1355_v29 = vmul.f32 %v1551_v54, %v1354_v56 }
 0xb43   :  { %v1366_v62 = vmul.f32 %v1365_v15, %v1363_v19 }
 0xb44   :  { %v1356_v22 = vmul.f32 0.5, %v1355_v29 }
 0xb45   :  { %v1369_v24 = vadd.f32 %v1368_v20, %v1366_v62 }
 0xb46   :  { %v1357_v27 = vsub.f32 1.5, %v1356_v22 }
 0xb47   :  { %1371 = vst.msk [vmem:[#allocation11] sm:$0xff] %vm168_vm0, %v1369_v24 }
 0xb48   :  { %v1358_v26 = vmul.f32 %v1551_v54, %v1357_v27 }
 0xb4a   :  { %v1362_v28 = vsel %vm1361_vm13, %v1551_v54, %v1358_v26 }
 0xb4b   :  { %v1364_v30 = vmul.f32 %v1362_v28, %v1330_v57 }
 0xb4d   :  { %v1367_v35 = vmul.f32 %v1365_v15, %v1364_v30 }
 0xb4f   :  { %v1370_v49 = vadd.f32 %v1368_v20, %v1367_v35 }
 0xb51   :  { %1372 = vst.msk [vmem:[#allocation11 + $0x8] sm:$0xff] %vm168_vm0, %v1370_v49 }
 0xb52   :  { %1385 = dma.vmem_to_hbm [thread:$0]  %s1378_s11, 256, %s1380_s28, [#allocation4], %s1705_s29, %s1705_s29, %s1706_s30  }
 0xb53   :  { %1702 = dma.done.wait [#allocation4], 256  }
 0xb54   :  { %1703 = vsyncadd [#allocation4], 4294967040 }
 0xb55   :  { %1390 = vsyncpa [#allocation3], 1 }
 0xb56   :  { %1391 = vsyncpa [#allocation6], 1 }
 0xb57   :  { %1392 = vsyncpa [#allocation9], 1 }
 0xb58   :  { %1393 = vsyncpa [#allocation4], 1 }

</bundles_post_ra>
